<compile_context>
chip_gen: v7x
topology: tpu7x:2x2x1
jax: 0.10.0
libtpu: 0.0.40
codegen_flags: <defaults>
</compile_context>

<pallas_src>
import math

import jax
import jax.numpy as jnp
from jax import lax
from jax.experimental import pallas as pl
from jax.experimental.pallas import tpu as pltpu

# ----------------------------- configuration (small shapes) -----------------------------
B = 2            # batch
LIDAR_DIM = 16   # lidar length (Conv1d length axis)
C = 32           # LidarCNN output_dim


def conv1d_out_len(lin, k, s, p):
    return (lin + 2 * p - k) // s + 1


L1 = conv1d_out_len(LIDAR_DIM, 5, 2, 6)     # conv1 output length
L2 = conv1d_out_len(L1, 3, 2, 1)            # conv2 output length
CONV_OUT = C * L2                           # fc1.in_features (torch shape probe, done analytically)
NON_LIDAR_DIM = 0                           # forced by fc2.in_features == 64 (see NOTE above)
NL_FEATS = CONV_OUT - L2                    # actual trailing dim of the non_lidar input

# Explicit guard for the shape coupling inherited from the PyTorch source.
assert 64 + NON_LIDAR_DIM == 64 and NL_FEATS == CONV_OUT - L2 and NL_FEATS >= 0, (
    "Critic.forward as written only type-checks when non_lidar_dim == 0 and "
    "non_lidar has trailing dim CONV_OUT - L2")


# ----------------------------- parameter init (deterministic) ---------------------------
def init_params(key):
    ks = jax.random.split(key, 10)

    def u(k, shape, bound):
        return jax.random.uniform(k, shape, jnp.float32, -bound, bound)

    p = {}
    b = 1.0 / math.sqrt(1 * 5)
    p["cw1"] = u(ks[0], (C, 1, 5), b)       # Conv1d(1, 32, k=5, s=2, p=6)
    p["cb1"] = u(ks[1], (C,), b)
    b = 1.0 / math.sqrt(C * 3)
    p["cw2"] = u(ks[2], (C, C, 3), b)       # Conv1d(32, 32, k=3, s=2, p=1)
    p["cb2"] = u(ks[3], (C,), b)
    xb = math.sqrt(6.0 / (CONV_OUT + 64))   # xavier_uniform_
    p["w1"] = u(ks[4], (64, CONV_OUT), xb)
    p["b1"] = u(ks[5], (64,), 1.0 / math.sqrt(CONV_OUT))
    xb = math.sqrt(6.0 / (64 + NON_LIDAR_DIM + 64))
    p["w2"] = u(ks[6], (64, 64 + NON_LIDAR_DIM), xb)
    p["b2"] = u(ks[7], (64,), 1.0 / math.sqrt(64 + NON_LIDAR_DIM))
    b = 1.0 / math.sqrt(64)
    p["w3"] = u(ks[8], (1, 64), b)
    p["b3"] = u(ks[9], (1,), b)
    return p


# ----------------------------- conv -> dense (Toeplitz) matrix (one-time glue) ----------
def conv1d_as_matrix(w, lin, stride, pad):
    """Return M of shape (Cin*Lin, Cout*Lout) so that conv1d(x) == x_flat @ M (+ bias)."""
    cout, cin, k = w.shape
    lout = (lin + 2 * pad - k) // stride + 1
    l = jnp.arange(lin)[:, None]
    t = jnp.arange(lout)[None, :]
    tap = l + pad - stride * t                       # which kernel tap touches (l, t)
    valid = (tap >= 0) & (tap < k)
    tap_c = jnp.clip(tap, 0, k - 1)
    wg = w[:, :, tap_c]                              # (Cout, Cin, Lin, Lout)
    wg = jnp.where(valid[None, None], wg, 0.0)
    m = jnp.transpose(wg, (1, 2, 0, 3)).reshape(cin * lin, cout * lout)
    return m, lout


# ----------------------------- fused Pallas kernel ---------------------------------------
def _critic_kernel(x_ref, nl_ref, m1_ref, cb1_ref, m2_ref, cb2_ref,
                   rep_ref, mask_ref, w1a_ref, w1b_ref, b1_ref,
                   w2_ref, b2_ref, w3_ref, b3_ref, pc_ref, pbt_ref, o_ref):
    f32 = jnp.float32
    # conv1 as Toeplitz matmul + bias + relu                         (B, C*L1)
    h = jnp.dot(x_ref[...], m1_ref[...], preferred_element_type=f32) + cb1_ref[...]
    h = jnp.maximum(h, 0.0)
    # conv2 as Toeplitz matmul + bias + relu                         (B, C*L2)
    h = jnp.dot(h, m2_ref[...], preferred_element_type=f32) + cb2_ref[...]
    h = jnp.maximum(h, 0.0)
    h = jnp.maximum(h, 0.0)   # Critic.forward's extra relu (idempotent, kept for fidelity)

    # "(B, C*L2) -> (B*C, L2)" reshape done on the MXU:
    #   rep (B*C, B) one-hot replicates batch rows; mask (B*C, C*L2) keeps only the
    #   channel-c slice of each row; w1a_tiled (C*L2, 64) is fc1's conv-feature weight
    #   tiled per channel, so (rep@h * mask) @ w1a_tiled == conv_rows @ w1a.
    r = jnp.dot(rep_ref[...], h, preferred_element_type=f32)                     # (B*C, C*L2)
    conv_fc1 = jnp.dot(r * mask_ref[...], w1a_ref[...], preferred_element_type=f32)

    # fc1 on concat([conv_rows, non_lidar_rows], -1), as split-weight sum         (B*C, 64)
    h = conv_fc1 + jnp.dot(nl_ref[...], w1b_ref[...], preferred_element_type=f32)
    h = jnp.maximum(h + b1_ref[...], 0.0)
    # fc2 + relu                                                                  (B*C, 64)
    h = jnp.maximum(jnp.dot(h, w2_ref[...], preferred_element_type=f32) + b2_ref[...], 0.0)
    # fc3 -> per-row scalar                                                       (B*C, 1)
    s = jnp.dot(h, w3_ref[...], preferred_element_type=f32) + b3_ref[...]
    # lane-dense output: scatter the (B*C,) scalars to a (B, C) slab via one-hot matmuls
    o_ref[...] = jnp.dot(pbt_ref[...], s * pc_ref[...], preferred_element_type=f32)


def _full_spec(shape):
    nd = len(shape)
    return pl.BlockSpec(shape, lambda i, _nd=nd: (0,) * _nd)


# ----------------------------- one-time parameter / constant prep ------------------------
def prepare_critic_constants(params, batch):
    m1, _ = conv1d_as_matrix(params["cw1"], LIDAR_DIM, 2, 6)       # (1*Lin, C*L1)
    m2, _ = conv1d_as_matrix(params["cw2"], L1, 2, 1)              # (C*L1, C*L2)
    cb1 = jnp.repeat(params["cb1"], L1).reshape(1, C * L1)
    cb2 = jnp.repeat(params["cb2"], L2).reshape(1, C * L2)

    rows = jnp.arange(batch * C)
    row_b = rows // C
    row_c = rows % C
    rep = (row_b[:, None] == jnp.arange(batch)[None, :]).astype(jnp.float32)   # (B*C, B)
    pbt = rep.T                                                                # (B, B*C)
    pc = (row_c[:, None] == jnp.arange(C)[None, :]).astype(jnp.float32)        # (B*C, C)
    mask = jnp.repeat(pc, L2, axis=1)                                          # (B*C, C*L2)

    w1t = params["w1"].T                     # (CONV_OUT, 64)
    w1a_tiled = jnp.tile(w1t[:L2], (C, 1))   # (C*L2, 64): per-channel copy of conv-slice weight
    w1b = w1t[L2:]                           # (NL_FEATS, 64): non_lidar slice of fc1 weight
    b1 = params["b1"].reshape(1, 64)
    w2t = params["w2"].T
    b2 = params["b2"].reshape(1, 64)
    w3t = params["w3"].T                     # (64, 1)
    b3 = params["b3"].reshape(1, 1)

    return (m1, cb1, m2, cb2, rep, mask, w1a_tiled, w1b, b1, w2t, b2, w3t, b3, pc, pbt)


def make_critic_forward(params, batch):
    """Build a jitted forward whose per-call path is a single fused pallas_call."""
    consts = prepare_critic_constants(params, batch)
    nrows = batch * C

    kernel_call = pl.pallas_call(
        _critic_kernel,
        out_shape=jax.ShapeDtypeStruct((batch, C), jnp.float32),
        grid=(1,),
        in_specs=[_full_spec((batch, LIDAR_DIM)), _full_spec((nrows, NL_FEATS))]
                 + [_full_spec(a.shape) for a in consts],
        out_specs=_full_spec((batch, C)),
        compiler_params=pltpu.CompilerParams(dimension_semantics=("arbitrary",)),
    )

    def forward(lidar, non_lidar):
        x_flat = lidar.reshape(batch, 1 * LIDAR_DIM).astype(jnp.float32)
        nl_rows = non_lidar.reshape(nrows, NL_FEATS).astype(jnp.float32)
        out2d = kernel_call(x_flat, nl_rows, *consts)     # (B, C), lane-dense
        return out2d.reshape(batch, C, 1)

    return jax.jit(forward)


# ----------------------------- pure-JAX reference (for sanity check) ---------------------
def critic_reference(params, lidar, non_lidar):
    x = lax.conv_general_dilated(lidar, params["cw1"], window_strides=(2,),
                                 padding=[(6, 6)], dimension_numbers=("NCH", "OIH", "NCH"))
    x = jnp.maximum(x + params["cb1"][None, :, None], 0.0)
    x = lax.conv_general_dilated(x, params["cw2"], window_strides=(2,),
                                 padding=[(1, 1)], dimension_numbers=("NCH", "OIH", "NCH"))
    x = jnp.maximum(x + params["cb2"][None, :, None], 0.0)
    x = jnp.maximum(x, 0.0)
    x = jnp.concatenate([x, non_lidar], axis=-1)
    x = jnp.maximum(x @ params["w1"].T + params["b1"], 0.0)
    x = jnp.maximum(x @ params["w2"].T + params["b2"], 0.0)
    return x @ params["w3"].T + params["b3"]


# ----------------------------- main -------------------------------------------------------
if __name__ == "__main__":
    key = jax.random.PRNGKey(0)
    kp, kl, kn = jax.random.split(key, 3)
    params = init_params(kp)

    lidar = jax.random.normal(kl, (B, 1, LIDAR_DIM), jnp.float32)          # NCL, like PyTorch
    non_lidar = jax.random.normal(kn, (B, C, NL_FEATS), jnp.float32)

    critic_forward = make_critic_forward(params, B)   # all param prep hoisted here (once)

    out = critic_forward(lidar, non_lidar)
    out = jax.block_until_ready(out)

    ref = critic_reference(params, lidar, non_lidar)
    assert out.shape == (B, C, 1), out.shape
    if not bool(jnp.allclose(out, ref, rtol=5e-2, atol=5e-2)):
        raise AssertionError(
            f"Pallas output mismatch, max abs err = {float(jnp.max(jnp.abs(out - ref)))}")

    print("KERNEL_OK")
</pallas_src>

<mosaic_0001>
module attributes {stable_mosaic.version = 11 : i64} {
  func.func @_critic_kernel(%arg0: i32, %arg1: memref<2x16xf32, #tpu.memory_space<vmem>>, %arg2: memref<64x186xf32, #tpu.memory_space<vmem>>, %arg3: memref<16x384xf32, #tpu.memory_space<vmem>>, %arg4: memref<1x384xf32, #tpu.memory_space<vmem>>, %arg5: memref<384x192xf32, #tpu.memory_space<vmem>>, %arg6: memref<1x192xf32, #tpu.memory_space<vmem>>, %arg7: memref<64x2xf32, #tpu.memory_space<vmem>>, %arg8: memref<64x192xf32, #tpu.memory_space<vmem>>, %arg9: memref<192x64xf32, #tpu.memory_space<vmem>>, %arg10: memref<186x64xf32, #tpu.memory_space<vmem>>, %arg11: memref<1x64xf32, #tpu.memory_space<vmem>>, %arg12: memref<64x64xf32, #tpu.memory_space<vmem>>, %arg13: memref<1x64xf32, #tpu.memory_space<vmem>>, %arg14: memref<64x1xf32, #tpu.memory_space<vmem>>, %arg15: memref<1x1xf32, #tpu.memory_space<vmem>>, %arg16: memref<64x32xf32, #tpu.memory_space<vmem>>, %arg17: memref<2x64xf32, #tpu.memory_space<vmem>>, %arg18: memref<2x32xf32, #tpu.memory_space<vmem>>) attributes {dimension_semantics = [#tpu.dimension_semantics<arbitrary>], iteration_bounds = array<i64: 1>, scalar_prefetch = 0 : i64, scratch_operands = 0 : i64, tpu.core_type = #tpu.core_type<tc>, window_params = [{pipeline_mode = #tpu.pipeline_mode<synchronous>, transform_indices = @transform_0, window_bounds = array<i64: 2, 16>}, {pipeline_mode = #tpu.pipeline_mode<synchronous>, transform_indices = @transform_1, window_bounds = array<i64: 64, 186>}, {pipeline_mode = #tpu.pipeline_mode<synchronous>, transform_indices = @transform_2, window_bounds = array<i64: 16, 384>}, {pipeline_mode = #tpu.pipeline_mode<synchronous>, transform_indices = @transform_3, window_bounds = array<i64: 1, 384>}, {pipeline_mode = #tpu.pipeline_mode<synchronous>, transform_indices = @transform_4, window_bounds = array<i64: 384, 192>}, {pipeline_mode = #tpu.pipeline_mode<synchronous>, transform_indices = @transform_5, window_bounds = array<i64: 1, 192>}, {pipeline_mode = #tpu.pipeline_mode<synchronous>, transform_indices = @transform_6, window_bounds = array<i64: 64, 2>}, {pipeline_mode = #tpu.pipeline_mode<synchronous>, transform_indices = @transform_7, window_bounds = array<i64: 64, 192>}, {pipeline_mode = #tpu.pipeline_mode<synchronous>, transform_indices = @transform_8, window_bounds = array<i64: 192, 64>}, {pipeline_mode = #tpu.pipeline_mode<synchronous>, transform_indices = @transform_9, window_bounds = array<i64: 186, 64>}, {pipeline_mode = #tpu.pipeline_mode<synchronous>, transform_indices = @transform_10, window_bounds = array<i64: 1, 64>}, {pipeline_mode = #tpu.pipeline_mode<synchronous>, transform_indices = @transform_11, window_bounds = array<i64: 64, 64>}, {pipeline_mode = #tpu.pipeline_mode<synchronous>, transform_indices = @transform_12, window_bounds = array<i64: 1, 64>}, {pipeline_mode = #tpu.pipeline_mode<synchronous>, transform_indices = @transform_13, window_bounds = array<i64: 64, 1>}, {pipeline_mode = #tpu.pipeline_mode<synchronous>, transform_indices = @transform_14, window_bounds = array<i64: 1, 1>}, {pipeline_mode = #tpu.pipeline_mode<synchronous>, transform_indices = @transform_15, window_bounds = array<i64: 64, 32>}, {pipeline_mode = #tpu.pipeline_mode<synchronous>, transform_indices = @transform_16, window_bounds = array<i64: 2, 64>}, {pipeline_mode = #tpu.pipeline_mode<synchronous>, transform_indices = @transform_17, window_bounds = array<i64: 2, 32>}]} {
    %c0 = arith.constant 0 : index
    %c0_0 = arith.constant 0 : index
    %0 = vector.load %arg1[%c0, %c0_0] : memref<2x16xf32, #tpu.memory_space<vmem>>, vector<2x16xf32>
    %c0_1 = arith.constant 0 : index
    %c0_2 = arith.constant 0 : index
    %1 = vector.load %arg3[%c0_1, %c0_2] : memref<16x384xf32, #tpu.memory_space<vmem>>, vector<16x384xf32>
    %cst = arith.constant dense<0.000000e+00> : vector<2x384xf32>
    %2 = tpu.matmul %0, %1, %cst {dimension_numbers = #tpu.dot_dimension_numbers<[1], [0], [0], [1], [0, 0, 1, 1], [], []>} : vector<2x16xf32>, vector<16x384xf32>, vector<2x384xf32> -> vector<2x384xf32>
    %c0_3 = arith.constant 0 : index
    %c0_4 = arith.constant 0 : index
    %3 = vector.load %arg4[%c0_3, %c0_4] : memref<1x384xf32, #tpu.memory_space<vmem>>, vector<1x384xf32>
    %4 = vector.broadcast %3 : vector<1x384xf32> to vector<2x384xf32>
    %5 = arith.addf %2, %4 : vector<2x384xf32>
    %cst_5 = arith.constant 0.000000e+00 : f32
    %6 = vector.broadcast %cst_5 : f32 to vector<2x384xf32>
    %7 = arith.maximumf %5, %6 : vector<2x384xf32>
    %c0_6 = arith.constant 0 : index
    %c0_7 = arith.constant 0 : index
    %8 = vector.load %arg5[%c0_6, %c0_7] : memref<384x192xf32, #tpu.memory_space<vmem>>, vector<384x192xf32>
    %cst_8 = arith.constant dense<0.000000e+00> : vector<2x192xf32>
    %9 = tpu.matmul %7, %8, %cst_8 {dimension_numbers = #tpu.dot_dimension_numbers<[1], [0], [0], [1], [0, 0, 1, 1], [], []>} : vector<2x384xf32>, vector<384x192xf32>, vector<2x192xf32> -> vector<2x192xf32>
    %c0_9 = arith.constant 0 : index
    %c0_10 = arith.constant 0 : index
    %10 = vector.load %arg6[%c0_9, %c0_10] : memref<1x192xf32, #tpu.memory_space<vmem>>, vector<1x192xf32>
    %11 = vector.broadcast %10 : vector<1x192xf32> to vector<2x192xf32>
    %12 = arith.addf %9, %11 : vector<2x192xf32>
    %cst_11 = arith.constant 0.000000e+00 : f32
    %13 = vector.broadcast %cst_11 : f32 to vector<2x192xf32>
    %14 = arith.maximumf %12, %13 : vector<2x192xf32>
    %cst_12 = arith.constant 0.000000e+00 : f32
    %15 = vector.broadcast %cst_12 : f32 to vector<2x192xf32>
    %16 = arith.maximumf %14, %15 : vector<2x192xf32>
    %c0_13 = arith.constant 0 : index
    %c0_14 = arith.constant 0 : index
    %17 = vector.load %arg7[%c0_13, %c0_14] : memref<64x2xf32, #tpu.memory_space<vmem>>, vector<64x2xf32>
    %cst_15 = arith.constant dense<0.000000e+00> : vector<64x192xf32>
    %18 = tpu.matmul %17, %16, %cst_15 {dimension_numbers = #tpu.dot_dimension_numbers<[1], [0], [0], [1], [0, 0, 1, 1], [], []>} : vector<64x2xf32>, vector<2x192xf32>, vector<64x192xf32> -> vector<64x192xf32>
    %c0_16 = arith.constant 0 : index
    %c0_17 = arith.constant 0 : index
    %19 = vector.load %arg8[%c0_16, %c0_17] : memref<64x192xf32, #tpu.memory_space<vmem>>, vector<64x192xf32>
    %20 = arith.mulf %18, %19 : vector<64x192xf32>
    %c0_18 = arith.constant 0 : index
    %c0_19 = arith.constant 0 : index
    %21 = vector.load %arg9[%c0_18, %c0_19] : memref<192x64xf32, #tpu.memory_space<vmem>>, vector<192x64xf32>
    %cst_20 = arith.constant dense<0.000000e+00> : vector<64x64xf32>
    %22 = tpu.matmul %20, %21, %cst_20 {dimension_numbers = #tpu.dot_dimension_numbers<[1], [0], [0], [1], [0, 0, 1, 1], [], []>} : vector<64x192xf32>, vector<192x64xf32>, vector<64x64xf32> -> vector<64x64xf32>
    %c0_21 = arith.constant 0 : index
    %c0_22 = arith.constant 0 : index
    %23 = vector.load %arg2[%c0_21, %c0_22] : memref<64x186xf32, #tpu.memory_space<vmem>>, vector<64x186xf32>
    %c0_23 = arith.constant 0 : index
    %c0_24 = arith.constant 0 : index
    %24 = vector.load %arg10[%c0_23, %c0_24] : memref<186x64xf32, #tpu.memory_space<vmem>>, vector<186x64xf32>
    %cst_25 = arith.constant dense<0.000000e+00> : vector<64x64xf32>
    %25 = tpu.matmul %23, %24, %cst_25 {dimension_numbers = #tpu.dot_dimension_numbers<[1], [0], [0], [1], [0, 0, 1, 1], [], []>} : vector<64x186xf32>, vector<186x64xf32>, vector<64x64xf32> -> vector<64x64xf32>
    %26 = arith.addf %22, %25 : vector<64x64xf32>
    %c0_26 = arith.constant 0 : index
    %c0_27 = arith.constant 0 : index
    %27 = vector.load %arg11[%c0_26, %c0_27] : memref<1x64xf32, #tpu.memory_space<vmem>>, vector<1x64xf32>
    %28 = vector.broadcast %27 : vector<1x64xf32> to vector<64x64xf32>
    %29 = arith.addf %26, %28 : vector<64x64xf32>
    %cst_28 = arith.constant 0.000000e+00 : f32
    %30 = vector.broadcast %cst_28 : f32 to vector<64x64xf32>
    %31 = arith.maximumf %29, %30 : vector<64x64xf32>
    %c0_29 = arith.constant 0 : index
    %c0_30 = arith.constant 0 : index
    %32 = vector.load %arg12[%c0_29, %c0_30] : memref<64x64xf32, #tpu.memory_space<vmem>>, vector<64x64xf32>
    %cst_31 = arith.constant dense<0.000000e+00> : vector<64x64xf32>
    %33 = tpu.matmul %31, %32, %cst_31 {dimension_numbers = #tpu.dot_dimension_numbers<[1], [0], [0], [1], [0, 0, 1, 1], [], []>} : vector<64x64xf32>, vector<64x64xf32>, vector<64x64xf32> -> vector<64x64xf32>
    %c0_32 = arith.constant 0 : index
    %c0_33 = arith.constant 0 : index
    %34 = vector.load %arg13[%c0_32, %c0_33] : memref<1x64xf32, #tpu.memory_space<vmem>>, vector<1x64xf32>
    %35 = vector.broadcast %34 : vector<1x64xf32> to vector<64x64xf32>
    %36 = arith.addf %33, %35 : vector<64x64xf32>
    %cst_34 = arith.constant 0.000000e+00 : f32
    %37 = vector.broadcast %cst_34 : f32 to vector<64x64xf32>
    %38 = arith.maximumf %36, %37 : vector<64x64xf32>
    %c0_35 = arith.constant 0 : index
    %c0_36 = arith.constant 0 : index
    %39 = vector.load %arg14[%c0_35, %c0_36] : memref<64x1xf32, #tpu.memory_space<vmem>>, vector<64x1xf32>
    %cst_37 = arith.constant dense<0.000000e+00> : vector<64x1xf32>
    %40 = tpu.matmul %38, %39, %cst_37 {dimension_numbers = #tpu.dot_dimension_numbers<[1], [0], [0], [1], [0, 0, 1, 1], [], []>} : vector<64x64xf32>, vector<64x1xf32>, vector<64x1xf32> -> vector<64x1xf32>
    %c0_38 = arith.constant 0 : index
    %c0_39 = arith.constant 0 : index
    %41 = vector.load %arg15[%c0_38, %c0_39] : memref<1x1xf32, #tpu.memory_space<vmem>>, vector<1x1xf32>
    %42 = vector.broadcast %41 : vector<1x1xf32> to vector<64x1xf32>
    %43 = arith.addf %40, %42 : vector<64x1xf32>
    %c0_40 = arith.constant 0 : index
    %c0_41 = arith.constant 0 : index
    %44 = vector.load %arg17[%c0_40, %c0_41] : memref<2x64xf32, #tpu.memory_space<vmem>>, vector<2x64xf32>
    %c0_42 = arith.constant 0 : index
    %c0_43 = arith.constant 0 : index
    %45 = vector.load %arg16[%c0_42, %c0_43] : memref<64x32xf32, #tpu.memory_space<vmem>>, vector<64x32xf32>
    %46 = vector.broadcast %43 : vector<64x1xf32> to vector<64x32xf32>
    %47 = arith.mulf %46, %45 : vector<64x32xf32>
    %cst_44 = arith.constant dense<0.000000e+00> : vector<2x32xf32>
    %48 = tpu.matmul %44, %47, %cst_44 {dimension_numbers = #tpu.dot_dimension_numbers<[1], [0], [0], [1], [0, 0, 1, 1], [], []>} : vector<2x64xf32>, vector<64x32xf32>, vector<2x32xf32> -> vector<2x32xf32>
    %c0_45 = arith.constant 0 : index
    %c0_46 = arith.constant 0 : index
    %49 = vector.load %arg18[%c0_45, %c0_46] : memref<2x32xf32, #tpu.memory_space<vmem>>, vector<2x32xf32>
    tpu.vector_store %arg18[%c0_45, %c0_46], %48 {strides = array<i32>} : memref<2x32xf32, #tpu.memory_space<vmem>>, vector<2x32xf32>,
    return
  }
  func.func @transform_0(%arg0: i32) -> (i32, i32) {
    %c0_i32 = arith.constant 0 : i32
    %c0_i32_0 = arith.constant 0 : i32
    %c0_i32_1 = arith.constant 0 : i32
    return %c0_i32, %c0_i32_0 : i32, i32
  }
  func.func @transform_1(%arg0: i32) -> (i32, i32) {
    %c0_i32 = arith.constant 0 : i32
    %c0_i32_0 = arith.constant 0 : i32
    %c0_i32_1 = arith.constant 0 : i32
    return %c0_i32, %c0_i32_0 : i32, i32
  }
  func.func @transform_2(%arg0: i32) -> (i32, i32) {
    %c0_i32 = arith.constant 0 : i32
    %c0_i32_0 = arith.constant 0 : i32
    %c0_i32_1 = arith.constant 0 : i32
    return %c0_i32, %c0_i32_0 : i32, i32
  }
  func.func @transform_3(%arg0: i32) -> (i32, i32) {
    %c0_i32 = arith.constant 0 : i32
    %c0_i32_0 = arith.constant 0 : i32
    %c0_i32_1 = arith.constant 0 : i32
    return %c0_i32, %c0_i32_0 : i32, i32
  }
  func.func @transform_4(%arg0: i32) -> (i32, i32) {
    %c0_i32 = arith.constant 0 : i32
    %c0_i32_0 = arith.constant 0 : i32
    %c0_i32_1 = arith.constant 0 : i32
    return %c0_i32, %c0_i32_0 : i32, i32
  }
  func.func @transform_5(%arg0: i32) -> (i32, i32) {
    %c0_i32 = arith.constant 0 : i32
    %c0_i32_0 = arith.constant 0 : i32
    %c0_i32_1 = arith.constant 0 : i32
    return %c0_i32, %c0_i32_0 : i32, i32
  }
  func.func @transform_6(%arg0: i32) -> (i32, i32) {
    %c0_i32 = arith.constant 0 : i32
    %c0_i32_0 = arith.constant 0 : i32
    %c0_i32_1 = arith.constant 0 : i32
    return %c0_i32, %c0_i32_0 : i32, i32
  }
  func.func @transform_7(%arg0: i32) -> (i32, i32) {
    %c0_i32 = arith.constant 0 : i32
    %c0_i32_0 = arith.constant 0 : i32
    %c0_i32_1 = arith.constant 0 : i32
    return %c0_i32, %c0_i32_0 : i32, i32
  }
  func.func @transform_8(%arg0: i32) -> (i32, i32) {
    %c0_i32 = arith.constant 0 : i32
    %c0_i32_0 = arith.constant 0 : i32
    %c0_i32_1 = arith.constant 0 : i32
    return %c0_i32, %c0_i32_0 : i32, i32
  }
  func.func @transform_9(%arg0: i32) -> (i32, i32) {
    %c0_i32 = arith.constant 0 : i32
    %c0_i32_0 = arith.constant 0 : i32
    %c0_i32_1 = arith.constant 0 : i32
    return %c0_i32, %c0_i32_0 : i32, i32
  }
  func.func @transform_10(%arg0: i32) -> (i32, i32) {
    %c0_i32 = arith.constant 0 : i32
    %c0_i32_0 = arith.constant 0 : i32
    %c0_i32_1 = arith.constant 0 : i32
    return %c0_i32, %c0_i32_0 : i32, i32
  }
  func.func @transform_11(%arg0: i32) -> (i32, i32) {
    %c0_i32 = arith.constant 0 : i32
    %c0_i32_0 = arith.constant 0 : i32
    %c0_i32_1 = arith.constant 0 : i32
    return %c0_i32, %c0_i32_0 : i32, i32
  }
  func.func @transform_12(%arg0: i32) -> (i32, i32) {
    %c0_i32 = arith.constant 0 : i32
    %c0_i32_0 = arith.constant 0 : i32
    %c0_i32_1 = arith.constant 0 : i32
    return %c0_i32, %c0_i32_0 : i32, i32
  }
  func.func @transform_13(%arg0: i32) -> (i32, i32) {
    %c0_i32 = arith.constant 0 : i32
    %c0_i32_0 = arith.constant 0 : i32
    %c0_i32_1 = arith.constant 0 : i32
    return %c0_i32, %c0_i32_0 : i32, i32
  }
  func.func @transform_14(%arg0: i32) -> (i32, i32) {
    %c0_i32 = arith.constant 0 : i32
    %c0_i32_0 = arith.constant 0 : i32
    %c0_i32_1 = arith.constant 0 : i32
    return %c0_i32, %c0_i32_0 : i32, i32
  }
  func.func @transform_15(%arg0: i32) -> (i32, i32) {
    %c0_i32 = arith.constant 0 : i32
    %c0_i32_0 = arith.constant 0 : i32
    %c0_i32_1 = arith.constant 0 : i32
    return %c0_i32, %c0_i32_0 : i32, i32
  }
  func.func @transform_16(%arg0: i32) -> (i32, i32) {
    %c0_i32 = arith.constant 0 : i32
    %c0_i32_0 = arith.constant 0 : i32
    %c0_i32_1 = arith.constant 0 : i32
    return %c0_i32, %c0_i32_0 : i32, i32
  }
  func.func @transform_17(%arg0: i32) -> (i32, i32) {
    %c0_i32 = arith.constant 0 : i32
    %c0_i32_0 = arith.constant 0 : i32
    %c0_i32_1 = arith.constant 0 : i32
    return %c0_i32, %c0_i32_0 : i32, i32
  }
}

</mosaic_0001>

<bundles_post_ra>
// kernel: forward.1
= control target key start
LH: loop header
LB: loop body
LE: loop exit
PB: predicated region body
PF: predicated region fallthrough
CT: control target
= control target key end

     0   :  { %s2695_s0 = inlined_call_operand.vmem [shape: f32[2,16], index: 0, kind: input, shape index: {}]   ;;  %s2696_s1 = inlined_call_operand.hbm [shape: f32[64,186], index: 1, kind: input, shape index: {}]   ;;  %s2697_s2 = inlined_call_operand.hbm [shape: f32[16,384], index: 2, kind: input, shape index: {}]   ;;  %s2698_s3 = inlined_call_operand.vmem [shape: f32[1,384], index: 3, kind: input, shape index: {}]   ;;  %s2699_s4 = inlined_call_operand.hbm [shape: f32[384,192], index: 4, kind: input, shape index: {}]   ;;  %s2700_s5 = inlined_call_operand.vmem [shape: f32[1,192], index: 5, kind: input, shape index: {}]   ;;  %s2701_s6 = inlined_call_operand.hbm [shape: f32[64,2], index: 6, kind: input, shape index: {}]   ;;  %s2702_s7 = inlined_call_operand.hbm [shape: f32[64,192], index: 7, kind: input, shape index: {}]   ;;  %s2703_s8 = inlined_call_operand.hbm [shape: f32[192,64], index: 8, kind: input, shape index: {}]   ;;  %s2704_s9 = inlined_call_operand.hbm [shape: f32[186,64], index: 9, kind: input, shape index: {}]   ;;  %s2705_s10 = inlined_call_operand.vmem [shape: f32[1,64], index: 10, kind: input, shape index: {}]   ;;  %s2706_s11 = inlined_call_operand.hbm [shape: f32[64,64], index: 11, kind: input, shape index: {}]   ;;  %s2707_s12 = inlined_call_operand.vmem [shape: f32[1,64], index: 12, kind: input, shape index: {}]   ;;  %s2708_s13 = inlined_call_operand.hbm [shape: f32[64,1], index: 13, kind: input, shape index: {}]   ;;  %s2709_s14 = inlined_call_operand.<no memory space> [shape: f32[1,1], index: 14, kind: input, shape index: {}]   ;;  %s2710_s15 = inlined_call_operand.hbm [shape: f32[64,32], index: 15, kind: input, shape index: {}]   ;;  %s2711_s16 = inlined_call_operand.vmem [shape: f32[2,64], index: 16, kind: input, shape index: {}]   ;;  %s2712_s17 = inlined_call_operand.hbm [shape: f32[2,32], index: 17, kind: output, shape index: {}]  }
   0x1   :  { %2714 = sst [smem:[#allocation28_spill]] %s2695_s0  ;;  %v22_v0 = vstv %s2709_s14 }
   0x2   :  { %2715 = sst [smem:[#allocation29_spill]] %s2696_s1  ;;  %23 = vst [vmem:[#allocation2] sm:$0x1] %v22_v0 }
   0x3   :  { %24 = vsyncpa [#allocation4], 0 }
   0x4   :  { %25 = vsyncpa [#allocation7], 0 }
   0x5   :  { %26 = vsyncpa [#allocation10], 0 }
   0x6   :  { %27 = vsyncpa [#allocation13], 0 }
   0x7   :  { %28 = vsyncpa [#allocation16], 0 }
   0x8   :  { %29 = vsyncpa [#allocation19], 0 }
   0x9   :  { %30 = vsyncpa [#allocation5], 0  ;;  %s2283_s26 = smov [#allocation6]   ;;  %s2027_s0 = scalar_lea.hbm %s2697_s2, 768 }
   0xa   :  { %s50_s27 = sshll.u32 %s2283_s26, 4  ;;  %p2028_p0 = scmp.ne.s32.totalorder %s2697_s2, %s2027_s0  ;;  %s51_s27 = int_to_ptr.vmem [resolvable:$true] %s50_s27 }
   0xb   :  { %p2031_p1 = scmp.lt.u32.totalorder %s2027_s0, %s2697_s2 }
   0xd   :  { %p2033_p2 = pnand %p2031_p1, %p2028_p0 }
   0xf   :  { %2036 = shalt.err (!%p2033_p2)
}
  0x10   :  { %s2037_s1 = scalar_lea.vmem %s51_s27, 768  ;;  %p2042_p4 = scmp.lt.s32.totalorder %s51_s27, %s51_s27 }
  0x11   :  { %p2038_p3 = scmp.ne.s32.totalorder %s51_s27, %s2037_s1  ;;  %p2043_p5 = scmp.lt.s32.totalorder %s2037_s1, %s2037_s1 }
  0x13   :  { %p2044_p6 = por %p2043_p5, %p2042_p4 }
  0x15   :  { %p2045_p7 = pnand %p2044_p6, %p2038_p3 }
  0x17   :  { %2048 = shalt.err (!%p2045_p7)
}
  0x18   :  { %s2284_s20 = smov 384   ;;  %s2285_s21 = smov 24  }
  0x19   :  { %56 = dma.hbm_to_vmem [thread:$0]  %s2697_s2, 768, %s51_s27, [#allocation7], %s2284_s20, %s2284_s20, %s2285_s21  }
  0x1a   :  { %s2286_s24 = smov [#allocation9]   ;;  %s2049_s29 = scalar_lea.hbm %s2701_s6, 1024 }
  0x1b   :  { %s78_s25 = sshll.u32 %s2286_s24, 4  ;;  %p2050_p8 = scmp.ne.s32.totalorder %s2701_s6, %s2049_s29  ;;  %s79_s25 = int_to_ptr.vmem [resolvable:$true] %s78_s25 }
  0x1c   :  { %p2053_p9 = scmp.lt.u32.totalorder %s2049_s29, %s2701_s6 }
  0x1e   :  { %p2055_p10 = pnand %p2053_p9, %p2050_p8 }
  0x20   :  { %2058 = shalt.err (!%p2055_p10)
}
  0x21   :  { %s2059_s19 = scalar_lea.vmem %s79_s25, 1024  ;;  %p2064_p12 = scmp.lt.s32.totalorder %s79_s25, %s79_s25 }
  0x22   :  { %p2060_p11 = scmp.ne.s32.totalorder %s79_s25, %s2059_s19  ;;  %p2065_p13 = scmp.lt.s32.totalorder %s2059_s19, %s2059_s19 }
  0x24   :  { %p2066_p0 = por %p2065_p13, %p2064_p12 }
  0x26   :  { %p2067_p1 = pnand %p2066_p0, %p2060_p11 }
  0x28   :  { %2070 = shalt.err (!%p2067_p1)
}
  0x29   :  { %s2287_s2 = smov 128   ;;  %s2288_s27 = smov 8  }
  0x2a   :  { %84 = dma.hbm_to_vmem [thread:$0]  %s2701_s6, 1024, %s79_s25, [#allocation10], %s2287_s2, %s2287_s2, %s2288_s27  }
  0x2b   :  { %s2289_s21 = smov [#allocation12]   ;;  %s2290_s23 = smov [#allocation15]  }
  0x2c   :  { %s102_s22 = sshll.u32 %s2289_s21, 4  ;;  %s128_s24 = sshll.u32 %s2290_s23, 4  ;;  %s103_s22 = int_to_ptr.vmem [resolvable:$true] %s102_s22  ;;  %s2425_s24 = int_to_ptr.vmem [resolvable:$true] %s128_s24 }
  0x2d   :  { %s2071_s29 = scalar_lea.hbm %s2703_s8, 3072 }
  0x2e   :  { %p2072_p2 = scmp.ne.s32.totalorder %s2703_s8, %s2071_s29  ;;  %p2075_p3 = scmp.lt.u32.totalorder %s2071_s29, %s2703_s8 }
  0x30   :  { %p2077_p4 = pnand %p2075_p3, %p2072_p2 }
  0x32   :  { %2080 = shalt.err (!%p2077_p4)
}
  0x33   :  { %s2081_s6 = scalar_lea.vmem %s103_s22, 3072  ;;  %p2086_p6 = scmp.lt.s32.totalorder %s103_s22, %s103_s22 }
  0x34   :  { %p2082_p5 = scmp.ne.s32.totalorder %s103_s22, %s2081_s6  ;;  %p2087_p7 = scmp.lt.s32.totalorder %s2081_s6, %s2081_s6 }
  0x36   :  { %p2088_p8 = por %p2087_p7, %p2086_p6 }
  0x38   :  { %p2089_p9 = pnand %p2088_p8, %p2082_p5 }
  0x3a   :  { %2092 = shalt.err (!%p2089_p9)
}
  0x3b   :  { %108 = dma.hbm_to_vmem [thread:$0]  %s2703_s8, 3072, %s103_s22, [#allocation13], %s2287_s2, %s2287_s2, %s2288_s27  }
  0x3c   :  { %s2093_s21 = scalar_lea.hbm %s2706_s11, 1024 }
  0x3d   :  { %p2094_p10 = scmp.ne.s32.totalorder %s2706_s11, %s2093_s21  ;;  %p2097_p11 = scmp.lt.u32.totalorder %s2093_s21, %s2706_s11 }
  0x3f   :  { %p2099_p12 = pnand %p2097_p11, %p2094_p10 }
  0x41   :  { %2102 = shalt.err (!%p2099_p12)
}
  0x42   :  { %s2103_s0 = scalar_lea.vmem %s2425_s24, 1024  ;;  %p2108_p0 = scmp.lt.s32.totalorder %s2425_s24, %s2425_s24 }
  0x43   :  { %p2104_p13 = scmp.ne.s32.totalorder %s2425_s24, %s2103_s0  ;;  %p2109_p1 = scmp.lt.s32.totalorder %s2103_s0, %s2103_s0 }
  0x45   :  { %p2110_p2 = por %p2109_p1, %p2108_p0 }
  0x47   :  { %p2111_p3 = pnand %p2110_p2, %p2104_p13 }
  0x49   :  { %2114 = shalt.err (!%p2111_p3)
}
  0x4a   :  { %134 = dma.hbm_to_vmem [thread:$0]  %s2706_s11, 1024, %s2425_s24, [#allocation16], %s2287_s2, %s2287_s2, %s2288_s27  }
  0x4b   :  { %s2291_s30 = smov [#allocation3]   ;;  %s2716_s25 = sld [smem:[#allocation29_spill]] }
  0x4c   :  { %s38_s18 = sshll.u32 %s2291_s30, 4  ;;  %s39_s18 = int_to_ptr.vmem [resolvable:$true] %s38_s18 }
  0x51   :  { %s2115_s19 = scalar_lea.hbm %s2716_s25, 2048 }
  0x52   :  { %p2116_p4 = scmp.ne.s32.totalorder %s2716_s25, %s2115_s19  ;;  %p2119_p5 = scmp.lt.u32.totalorder %s2115_s19, %s2716_s25 }
  0x54   :  { %p2121_p6 = pnand %p2119_p5, %p2116_p4 }
  0x56   :  { %2124 = shalt.err (!%p2121_p6)
}
  0x57   :  { %s2125_s26 = scalar_lea.vmem %s39_s18, 2048  ;;  %p2130_p8 = scmp.lt.s32.totalorder %s39_s18, %s39_s18 }
  0x58   :  { %p2126_p7 = scmp.ne.s32.totalorder %s39_s18, %s2125_s26  ;;  %p2131_p9 = scmp.lt.s32.totalorder %s2125_s26, %s2125_s26 }
  0x5a   :  { %p2132_p10 = por %p2131_p9, %p2130_p8 }
  0x5c   :  { %p2133_p11 = pnand %p2132_p10, %p2126_p7 }
  0x5e   :  { %2136 = shalt.err (!%p2133_p11)
}
  0x5f   :  { %s2292_s11 = smov 256   ;;  %s2293_s24 = smov 16  }
  0x60   :  { %44 = dma.hbm_to_vmem [thread:$0]  %s2716_s25, 2048, %s39_s18, [#allocation4], %s2292_s11, %s2292_s11, %s2293_s24  }
  0x61   :  { %s2294_s0 = smov [#allocation8]   ;;  %s2295_s22 = smov [#allocation11]  }
  0x62   :  { %s64_s8 = sshll.u32 %s2294_s0, 4  ;;  %s90_s30 = sshll.u32 %s2295_s22, 4  ;;  %s65_s8 = int_to_ptr.vmem [resolvable:$true] %s64_s8  ;;  %s91_s30 = int_to_ptr.vmem [resolvable:$true] %s90_s30 }
  0x63   :  { %s2137_s19 = scalar_lea.hbm %s2699_s4, 12288 }
  0x64   :  { %p2138_p12 = scmp.ne.s32.totalorder %s2699_s4, %s2137_s19  ;;  %p2141_p13 = scmp.lt.u32.totalorder %s2137_s19, %s2699_s4 }
  0x66   :  { %p2143_p0 = pnand %p2141_p13, %p2138_p12 }
  0x68   :  { %2146 = shalt.err (!%p2143_p0)
}
  0x69   :  { %s2147_s18 = scalar_lea.vmem %s65_s8, 12288  ;;  %p2152_p2 = scmp.lt.s32.totalorder %s65_s8, %s65_s8 }
  0x6a   :  { %p2148_p1 = scmp.ne.s32.totalorder %s65_s8, %s2147_s18  ;;  %p2153_p3 = scmp.lt.s32.totalorder %s2147_s18, %s2147_s18 }
  0x6c   :  { %p2154_p4 = por %p2153_p3, %p2152_p2 }
  0x6e   :  { %p2155_p5 = pnand %p2154_p4, %p2148_p1 }
  0x70   :  { %2158 = shalt.err (!%p2155_p5)
}
  0x71   :  { %70 = dma.hbm_to_vmem [thread:$0]  %s2699_s4, 12288, %s65_s8, [#allocation7], %s2292_s11, %s2292_s11, %s2293_s24  }
  0x72   :  { %s2159_s0 = scalar_lea.hbm %s2702_s7, 2048 }
  0x73   :  { %p2160_p6 = scmp.ne.s32.totalorder %s2702_s7, %s2159_s0  ;;  %p2163_p7 = scmp.lt.u32.totalorder %s2159_s0, %s2702_s7 }
  0x75   :  { %p2165_p8 = pnand %p2163_p7, %p2160_p6 }
  0x77   :  { %2168 = shalt.err (!%p2165_p8)
}
  0x78   :  { %s2169_s1 = scalar_lea.vmem %s91_s30, 2048  ;;  %p2174_p10 = scmp.lt.s32.totalorder %s91_s30, %s91_s30 }
  0x79   :  { %p2170_p9 = scmp.ne.s32.totalorder %s91_s30, %s2169_s1  ;;  %p2175_p11 = scmp.lt.s32.totalorder %s2169_s1, %s2169_s1 }
  0x7b   :  { %p2176_p12 = por %p2175_p11, %p2174_p10 }
  0x7d   :  { %p2177_p13 = pnand %p2176_p12, %p2170_p9 }
  0x7f   :  { %2180 = shalt.err (!%p2177_p13)
}
  0x80   :  { %96 = dma.hbm_to_vmem [thread:$0]  %s2702_s7, 2048, %s91_s30, [#allocation10], %s2292_s11, %s2292_s11, %s2293_s24  }
  0x81   :  { %s2296_s20 = smov [#allocation14]   ;;  %s2297_s23 = smov [#allocation17]  }
  0x82   :  { %s114_s21 = sshll.u32 %s2296_s20, 4  ;;  %s142_s18 = sshll.u32 %s2297_s23, 4  ;;  %s115_s21 = int_to_ptr.vmem [resolvable:$true] %s114_s21  ;;  %s143_s18 = int_to_ptr.vmem [resolvable:$true] %s142_s18 }
  0x83   :  { %s2181_s28 = scalar_lea.hbm %s2704_s9, 3072 }
  0x84   :  { %p2182_p0 = scmp.ne.s32.totalorder %s2704_s9, %s2181_s28  ;;  %p2185_p1 = scmp.lt.u32.totalorder %s2181_s28, %s2704_s9 }
  0x86   :  { %p2187_p2 = pnand %p2185_p1, %p2182_p0 }
  0x88   :  { %2190 = shalt.err (!%p2187_p2)
}
  0x89   :  { %s2191_s7 = scalar_lea.vmem %s115_s21, 3072  ;;  %p2196_p4 = scmp.lt.s32.totalorder %s115_s21, %s115_s21 }
  0x8a   :  { %p2192_p3 = scmp.ne.s32.totalorder %s115_s21, %s2191_s7  ;;  %p2197_p5 = scmp.lt.s32.totalorder %s2191_s7, %s2191_s7 }
  0x8c   :  { %p2198_p6 = por %p2197_p5, %p2196_p4 }
  0x8e   :  { %p2199_p7 = pnand %p2198_p6, %p2192_p3 }
  0x90   :  { %2202 = shalt.err (!%p2199_p7)
}
  0x91   :  { %120 = dma.hbm_to_vmem [thread:$0]  %s2704_s9, 3072, %s115_s21, [#allocation13], %s2287_s2, %s2287_s2, %s2288_s27  }
  0x92   :  { %s2203_s19 = scalar_lea.hbm %s2708_s13, 1024 }
  0x93   :  { %p2204_p8 = scmp.ne.s32.totalorder %s2708_s13, %s2203_s19  ;;  %p2207_p9 = scmp.lt.u32.totalorder %s2203_s19, %s2708_s13 }
  0x95   :  { %p2209_p10 = pnand %p2207_p9, %p2204_p8 }
  0x97   :  { %2212 = shalt.err (!%p2209_p10)
}
  0x98   :  { %s2213_s23 = scalar_lea.vmem %s143_s18, 1024  ;;  %p2218_p12 = scmp.lt.s32.totalorder %s143_s18, %s143_s18 }
  0x99   :  { %p2214_p11 = scmp.ne.s32.totalorder %s143_s18, %s2213_s23  ;;  %p2219_p13 = scmp.lt.s32.totalorder %s2213_s23, %s2213_s23 }
  0x9b   :  { %p2220_p0 = por %p2219_p13, %p2218_p12 }
  0x9d   :  { %p2221_p1 = pnand %p2220_p0, %p2214_p11 }
  0x9f   :  { %2224 = shalt.err (!%p2221_p1)
}
  0xa0   :  { %148 = dma.hbm_to_vmem [thread:$0]  %s2708_s13, 1024, %s143_s18, [#allocation16], %s2287_s2, %s2287_s2, %s2288_s27  }
  0xa1   :  { %s2298_s25 = smov [#allocation18]   ;;  %s2225_s0 = scalar_lea.hbm %s2710_s15, 1024 }
  0xa2   :  { %s156_s26 = sshll.u32 %s2298_s25, 4  ;;  %p2226_p2 = scmp.ne.s32.totalorder %s2710_s15, %s2225_s0  ;;  %s157_s26 = int_to_ptr.vmem [resolvable:$true] %s156_s26 }
  0xa3   :  { %p2229_p3 = scmp.lt.u32.totalorder %s2225_s0, %s2710_s15 }
  0xa5   :  { %p2231_p4 = pnand %p2229_p3, %p2226_p2 }
  0xa7   :  { %2234 = shalt.err (!%p2231_p4)
}
  0xa8   :  { %s2235_s24 = scalar_lea.vmem %s157_s26, 1024  ;;  %p2240_p6 = scmp.lt.s32.totalorder %s157_s26, %s157_s26 }
  0xa9   :  { %p2236_p5 = scmp.ne.s32.totalorder %s157_s26, %s2235_s24  ;;  %p2241_p7 = scmp.lt.s32.totalorder %s2235_s24, %s2235_s24 }
  0xab   :  { %p2242_p8 = por %p2241_p7, %p2240_p6 }
  0xad   :  { %p2243_p9 = pnand %p2242_p8, %p2236_p5 }
  0xaf   :  { %2246 = shalt.err (!%p2243_p9)
}
  0xb0   :  { %162 = dma.hbm_to_vmem [thread:$0]  %s2710_s15, 1024, %s157_s26, [#allocation19], %s2287_s2, %s2287_s2, %s2288_s27  }
  0xb1   :  { %2269 = dma.done.wait [#allocation4], 2048  }
  0xb2   :  { %2270 = vsyncadd [#allocation4], 4294965248 }
  0xb3   :  { %2271 = dma.done.wait [#allocation7], 13056  }
  0xb4   :  { %2272 = vsyncadd [#allocation7], 4294954240 }
  0xb5   :  { %2273 = dma.done.wait [#allocation10], 3072  }
  0xb6   :  { %2274 = vsyncadd [#allocation10], 4294964224 }
  0xb7   :  { %2275 = dma.done.wait [#allocation13], 6144  }
  0xb8   :  { %2276 = vsyncadd [#allocation13], 4294961152 }
  0xb9   :  { %2277 = dma.done.wait [#allocation16], 2048  }
  0xba   :  { %2278 = vsyncadd [#allocation16], 4294965248 }
  0xbb   :  { %2279 = dma.done.wait [#allocation19], 1024  }
  0xbc   :  { %2280 = vsyncadd [#allocation19], 4294966272  ;;  %v2299_v1 = vmov 0.0   ;;  %v197_v2 = vld [vmem:[#allocation6 + $0x8] sm:$0xff]  ;;  %v200_v3 = vld [vmem:[#allocation6 + $0x20] sm:$0xff]  ;;  %s2717_s27 = sld [smem:[#allocation28_spill]] }
  0xbd   :  { %287 = vmatprep.mubr.f32.mxu1 %v2299_v1  ;;  %v196_v4 = vld [vmem:[#allocation6] sm:$0xff]  ;;  %v1779_v5 = vpack.c.bf16 %v200_v3, %v197_v2  ;;  %v199_v6 = vld [vmem:[#allocation6 + $0x18] sm:$0xff]  ;;  %v198_v7 = vld [vmem:[#allocation6 + $0x10] sm:$0xff]  ;;  %vm219_vm0 = vcmask 130048   ;;  %v2300_v22 = vmov 0.0|0.0   ;;  %vm2301_vm1 = vmmov 0  }
  0xbe   :  { %v1781_v8 = vpack.c.bf16 %v199_v6, %v196_v4  ;;  %v201_v10 = vld [vmem:[#allocation6 + $0x28] sm:$0xff]  ;;  %v368_v11 = vld [vmem:[#allocation8 + $0x8] sm:$0xff]  ;;  %v367_v14 = vld [vmem:[#allocation8] sm:$0xff]  ;;  %vm654_vm2 = vcmask 1041408   ;;  %vm629_vm3 = vcmask 15360   ;;  %vm870_vm4 = vcmask 474112  }
  0xbf   :  { %v370_v12 = vld [vmem:[#allocation8 + $0x18] sm:$0xff]  ;;  %1780 = vmatprep.subr.bf16.mxu1 %v1779_v5  ;;  %v369_v15 = vld [vmem:[#allocation8 + $0x10] sm:$0xff]  ;;  %v372_v16 = vld [vmem:[#allocation8 + $0x28] sm:$0xff]  ;;  %v1784_v17 = vpack.c.bf16 %v201_v10, %v198_v7  ;;  %vm2302_vm5 = vmmov 1   ;;  %vm1003_vm7 = vcmask 523264   ;;  %s2304_s20 = smov [#allocation20]  }
  0xc0   :  { %v1786_v13 = vpack.c.bf16 %v370_v12, %v368_v11  ;;  %1782 = vmatpush1.bf16.msra.mxu1 %v1781_v8  ;;  %v1788_v18 = vpack.c.bf16 %v369_v15, %v367_v14  ;;  %v374_v19 = vld [vmem:[#allocation8 + $0x38] sm:$0xff]  ;;  %v371_v20 = vld [vmem:[#allocation8 + $0x20] sm:$0xff]  ;;  %v373_v21 = vld [vmem:[#allocation8 + $0x30] sm:$0xff]  ;;  %s1590_s23 = sshll.u32 %s2304_s20, 4  ;;  %vm1582_vm8 = vcmask 254976   ;;  %s1591_s23 = int_to_ptr.vmem [resolvable:$true] %s1590_s23 }
  0xc1   :  { %1783 = vmatprep.subr.bf16.mxu1 %v2300_v22  ;;  %v1790_v23 = vpack.c.bf16 %v374_v19, %v372_v16  ;;  %v376_v24 = vld [vmem:[#allocation8 + $0x48] sm:$0xff]  ;;  %v378_v25 = vld [vmem:[#allocation8 + $0x58] sm:$0xff]  ;;  %v1792_v26 = vpack.c.bf16 %v373_v21, %v371_v20  ;;  %v375_v28 = vld [vmem:[#allocation8 + $0x40] sm:$0xff]  ;;  %s2247_s9 = scalar_lea.vmem %s1591_s23, 32  ;;  %p2252_p11 = scmp.lt.s32.totalorder %s1591_s23, %s1591_s23 }
  0xc2   :  { %v195_v9 = vld [vmem:[%s2717_s27] sm:$0x3]  ;;  %1787 = vmatprep.subr.bf16.mxu0 %v1786_v13  ;;  %v1794_v27 = vpack.c.bf16 %v378_v25, %v376_v24  ;;  %v382_v31 = vld [vmem:[#allocation8 + $0x78] sm:$0xff]  ;;  %v379_v34 = vld [vmem:[#allocation8 + $0x60] sm:$0xff]  ;;  %p2248_p10 = scmp.ne.s32.totalorder %s1591_s23, %s2247_s9  ;;  %p2253_p12 = scmp.lt.s32.totalorder %s2247_s9, %s2247_s9 }
  0xc3   :  { %1789 = vmatpush1.bf16.msra.mxu0 %v1788_v18  ;;  %1604 = vmatmul.mubr.msk.f32.vlgmr.msra.gmra.mrb[0].mxu1 %vm219_vm0, %v195_v9  ;;  %v377_v29 = vld [vmem:[#allocation8 + $0x50] sm:$0xff]  ;;  %v380_v30 = vld [vmem:[#allocation8 + $0x68] sm:$0xff]  ;;  %v386_v37 = vld [vmem:[#allocation8 + $0x98] sm:$0xff] }
  0xc4   :  { %1791 = vmatprep.subr.bf16.mxu0 %v1790_v23  ;;  %1785 = vmatpush3.bf16.msra.mxu1 %v1784_v17  ;;  %v1796_v32 = vpack.c.bf16 %v377_v29, %v375_v28  ;;  %v1798_v33 = vpack.c.bf16 %v382_v31, %v380_v30  ;;  %v381_v35 = vld [vmem:[#allocation8 + $0x70] sm:$0xff]  ;;  %v384_v36 = vld [vmem:[#allocation8 + $0x88] sm:$0xff]  ;;  %v383_v40 = vld [vmem:[#allocation8 + $0x80] sm:$0xff]  ;;  %p2254_p13 = por %p2253_p12, %p2252_p11 }
  0xc5   :  { %1701 = vmatprep.mubr.msk.f32.mxu1 %vm2301_vm1, %v2299_v1  ;;  %v1800_v38 = vpack.c.bf16 %v381_v35, %v379_v34  ;;  %v1802_v39 = vpack.c.bf16 %v386_v37, %v384_v36  ;;  %v385_v41 = vld [vmem:[#allocation8 + $0x90] sm:$0xff]  ;;  %v388_v42 = vld [vmem:[#allocation8 + $0xa8] sm:$0xff]  ;;  %v390_v43 = vld [vmem:[#allocation8 + $0xb8] sm:$0xff] }
  0xc6   :  { %v1804_v44 = vpack.c.bf16 %v385_v41, %v383_v40  ;;  %v1806_v45 = vpack.c.bf16 %v390_v43, %v388_v42  ;;  %v387_v46 = vld [vmem:[#allocation8 + $0xa0] sm:$0xff]  ;;  %v389_v47 = vld [vmem:[#allocation8 + $0xb0] sm:$0xff]  ;;  %v392_v48 = vld [vmem:[#allocation8 + $0xc8] sm:$0xff]  ;;  %p2255_p0 = pnand %p2254_p13, %p2248_p10 }
  0xc7   :  { %1793 = vmatpush1.bf16.msra.mxu0 %v1792_v26  ;;  %1702 = vmatmul.mubr.msk.f32.vlgmr.msra.gmra.mrb[2].mxu1 %vm219_vm0, %v195_v9  ;;  %v394_v49 = vld [vmem:[#allocation8 + $0xd8] sm:$0xff]  ;;  %v1808_v50 = vpack.c.bf16 %v389_v47, %v387_v46  ;;  %v391_v52 = vld [vmem:[#allocation8 + $0xc0] sm:$0xff]  ;;  %v393_v53 = vld [vmem:[#allocation8 + $0xd0] sm:$0xff] }
  0xc8   :  { %1795 = vmatprep.subr.bf16.mxu0 %v1794_v27  ;;  %725 = vmatprep.mubr.f32.mxu1 %v2299_v1  ;;  %v1810_v51 = vpack.c.bf16 %v394_v49, %v392_v48  ;;  %v396_v54 = vld [vmem:[#allocation8 + $0xe8] sm:$0xff]  ;;  %v398_v55 = vld [vmem:[#allocation8 + $0xf8] sm:$0xff]  ;;  %v1812_v56 = vpack.c.bf16 %v393_v53, %v391_v52  ;;  %v395_v58 = vld [vmem:[#allocation8 + $0xe0] sm:$0xff] }
  0xc9   :  { %v1814_v57 = vpack.c.bf16 %v398_v55, %v396_v54  ;;  %v397_v59 = vld [vmem:[#allocation8 + $0xf0] sm:$0xff]  ;;  %v400_v60 = vld [vmem:[#allocation8 + $0x108] sm:$0xff]  ;;  %v402_v61 = vld [vmem:[#allocation8 + $0x118] sm:$0xff] }
  0xca   :  { %v1816_v62 = vpack.c.bf16 %v397_v59, %v395_v58  ;;  %v1818_v63 = vpack.c.bf16 %v402_v61, %v400_v60  ;;  %v399_v0 = vld [vmem:[#allocation8 + $0x100] sm:$0xff]  ;;  %v401_v2 = vld [vmem:[#allocation8 + $0x110] sm:$0xff]  ;;  %v404_v3 = vld [vmem:[#allocation8 + $0x128] sm:$0xff] }
  0xcb   :  { %1797 = vmatpush1.bf16.msra.mxu0 %v1796_v32  ;;  %v406_v4 = vld [vmem:[#allocation8 + $0x138] sm:$0xff]  ;;  %v1820_v5 = vpack.c.bf16 %v401_v2, %v399_v0  ;;  %v403_v7 = vld [vmem:[#allocation8 + $0x120] sm:$0xff]  ;;  %v405_v8 = vld [vmem:[#allocation8 + $0x130] sm:$0xff] }
  0xcc   :  { %1799 = vmatprep.subr.bf16.mxu0 %v1798_v33  ;;  %v1822_v6 = vpack.c.bf16 %v406_v4, %v404_v3  ;;  %v408_v9 = vld [vmem:[#allocation8 + $0x148] sm:$0xff]  ;;  %v410_v10 = vld [vmem:[#allocation8 + $0x158] sm:$0xff]  ;;  %v1824_v11 = vpack.c.bf16 %v405_v8, %v403_v7  ;;  %v407_v13 = vld [vmem:[#allocation8 + $0x140] sm:$0xff] }
  0xcd   :  { %v1826_v12 = vpack.c.bf16 %v410_v10, %v408_v9  ;;  %v409_v14 = vld [vmem:[#allocation8 + $0x150] sm:$0xff]  ;;  %v412_v15 = vld [vmem:[#allocation8 + $0x168] sm:$0xff]  ;;  %v414_v16 = vld [vmem:[#allocation8 + $0x178] sm:$0xff] }
  0xce   :  { %v1828_v17 = vpack.c.bf16 %v409_v14, %v407_v13  ;;  %v1830_v18 = vpack.c.bf16 %v414_v16, %v412_v15  ;;  %v411_v19 = vld [vmem:[#allocation8 + $0x160] sm:$0xff]  ;;  %v413_v20 = vld [vmem:[#allocation8 + $0x170] sm:$0xff]  ;;  %v416_v21 = vld [vmem:[#allocation8 + $0x188] sm:$0xff] }
  0xcf   :  { %1801 = vmatpush1.bf16.msra.mxu0 %v1800_v38  ;;  %v418_v23 = vld [vmem:[#allocation8 + $0x198] sm:$0xff]  ;;  %v1832_v24 = vpack.c.bf16 %v413_v20, %v411_v19  ;;  %v415_v26 = vld [vmem:[#allocation8 + $0x180] sm:$0xff]  ;;  %v417_v27 = vld [vmem:[#allocation8 + $0x190] sm:$0xff] }
  0xd0   :  { %1803 = vmatprep.subr.bf16.mxu0 %v1802_v39  ;;  %v1834_v25 = vpack.c.bf16 %v418_v23, %v416_v21  ;;  %v420_v28 = vld [vmem:[#allocation8 + $0x1a8] sm:$0xff]  ;;  %v422_v29 = vld [vmem:[#allocation8 + $0x1b8] sm:$0xff]  ;;  %v1836_v30 = vpack.c.bf16 %v417_v27, %v415_v26  ;;  %v419_v32 = vld [vmem:[#allocation8 + $0x1a0] sm:$0xff] }
  0xd1   :  { %v1838_v31 = vpack.c.bf16 %v422_v29, %v420_v28  ;;  %v421_v33 = vld [vmem:[#allocation8 + $0x1b0] sm:$0xff]  ;;  %v424_v34 = vld [vmem:[#allocation8 + $0x1c8] sm:$0xff]  ;;  %v426_v35 = vld [vmem:[#allocation8 + $0x1d8] sm:$0xff] }
  0xd2   :  { %v1840_v36 = vpack.c.bf16 %v421_v33, %v419_v32  ;;  %v1842_v37 = vpack.c.bf16 %v426_v35, %v424_v34  ;;  %v423_v38 = vld [vmem:[#allocation8 + $0x1c0] sm:$0xff]  ;;  %v425_v39 = vld [vmem:[#allocation8 + $0x1d0] sm:$0xff]  ;;  %v428_v41 = vld [vmem:[#allocation8 + $0x1e8] sm:$0xff] }
  0xd3   :  { %1805 = vmatpush1.bf16.msra.mxu0 %v1804_v44  ;;  %v1844_v40 = vpack.c.bf16 %v425_v39, %v423_v38  ;;  %v430_v42 = vld [vmem:[#allocation8 + $0x1f8] sm:$0xff]  ;;  %v427_v44 = vld [vmem:[#allocation8 + $0x1e0] sm:$0xff]  ;;  %v432_v47 = vld [vmem:[#allocation8 + $0x208] sm:$0xff] }
  0xd4   :  { %1807 = vmatprep.subr.bf16.mxu0 %v1806_v45  ;;  %v1846_v43 = vpack.c.bf16 %v430_v42, %v428_v41  ;;  %v429_v45 = vld [vmem:[#allocation8 + $0x1f0] sm:$0xff]  ;;  %v434_v48 = vld [vmem:[#allocation8 + $0x218] sm:$0xff]  ;;  %v431_v60 = vld [vmem:[#allocation8 + $0x200] sm:$0xff] }
  0xd5   :  { %v1848_v46 = vpack.c.bf16 %v429_v45, %v427_v44  ;;  %v1850_v49 = vpack.c.bf16 %v434_v48, %v432_v47  ;;  %v2568_v53 = vld [vmem:[%s2698_s3] sm:$0x7]  ;;  %v438_v0 = vld [vmem:[#allocation8 + $0x238] sm:$0xff]  ;;  %v435_v7 = vld [vmem:[#allocation8 + $0x220] sm:$0xff] }
  0xd6   :  { %v433_v61 = vld [vmem:[#allocation8 + $0x210] sm:$0xff]  ;;  %v440_v10 = vld [vmem:[#allocation8 + $0x248] sm:$0xff]  ;;  %v439_v14 = vld [vmem:[#allocation8 + $0x240] sm:$0xff] }
  0xd7   :  { %1809 = vmatpush1.bf16.msra.mxu0 %v1808_v50  ;;  %v204_v50 = vlaneseq  ;;  %v1852_v3 = vpack.c.bf16 %v433_v61, %v431_v60  ;;  %v437_v8 = vld [vmem:[#allocation8 + $0x230] sm:$0xff]  ;;  %v444_v16 = vld [vmem:[#allocation8 + $0x268] sm:$0xff]  ;;  %v443_v20 = vld [vmem:[#allocation8 + $0x260] sm:$0xff] }
  0xd8   :  { %1811 = vmatprep.subr.bf16.mxu0 %v1810_v51  ;;  %v441_v15 = vld [vmem:[#allocation8 + $0x250] sm:$0xff]  ;;  %v448_v23 = vld [vmem:[#allocation8 + $0x288] sm:$0xff]  ;;  %v447_v27 = vld [vmem:[#allocation8 + $0x280] sm:$0xff] }
  0xd9   :  { %v2562_v51 = vshrl.u32 %v204_v50, 7  ;;  %v445_v21 = vld [vmem:[#allocation8 + $0x270] sm:$0xff]  ;;  %v452_v29 = vld [vmem:[#allocation8 + $0x2a8] sm:$0xff]  ;;  %v451_v33 = vld [vmem:[#allocation8 + $0x2a0] sm:$0xff] }
  0xda   :  { %v449_v28 = vld [vmem:[#allocation8 + $0x290] sm:$0xff]  ;;  %v456_v35 = vld [vmem:[#allocation8 + $0x2c8] sm:$0xff]  ;;  %v459_v47 = vld [vmem:[#allocation8 + $0x2e0] sm:$0xff] }
  0xdb   :  { %1813 = vmatpush1.bf16.msra.mxu0 %v1812_v56  ;;  %v206_v52 = vsub.s32 0, %v2562_v51  ;;  %v210_v54 = vsub.s32 1, %v2562_v51  ;;  %v453_v34 = vld [vmem:[#allocation8 + $0x2b0] sm:$0xff]  ;;  %v460_v42 = vld [vmem:[#allocation8 + $0x2e8] sm:$0xff]  ;;  %vm1917_vm6 = vmpackc.low %vm654_vm2, %vm2302_vm5 }
  0xdc   :  { %1815 = vmatprep.subr.bf16.mxu0 %v1814_v57  ;;  %v1872_v38 = vpack.c.bf16 %v453_v34, %v451_v33  ;;  %v457_v41 = vld [vmem:[#allocation8 + $0x2d0] sm:$0xff]  ;;  %v862_v33 = vld [vmem:[#allocation14 + $0x80] sm:$0xff]  ;;  %v863_v34 = vld [vmem:[#allocation14 + $0x88] sm:$0xff] }
  0xdd   :  { %v207_v55 = vrot.slane %v2568_v53, %v206_v52  ;;  %v211_v56 = vrot.slane %v2568_v53, %v210_v54  ;;  %v461_v48 = vld [vmem:[#allocation8 + $0x2f0] sm:$0xff] }
  0xde   :  { %v1880_v50 = vpack.c.bf16 %v461_v48, %v459_v47  ;;  %v807_v47 = vld [vmem:[#allocation12 + $0x8] sm:$0xff]  ;;  %v830_v48 = vld [vmem:[#allocation3] sm:$0xff] }
  0xdf   :  { %1817 = vmatpush1.bf16.msra.mxu0 %v1816_v62 }
  0xe0   :  { %1819 = vmatprep.subr.bf16.mxu0 %v1818_v63  ;;  %v436_v63 = vld [vmem:[#allocation8 + $0x228] sm:$0xff] }
  0xe3   :  { %1821 = vmatpush1.bf16.msra.mxu0 %v1820_v5 }
  0xe4   :  { %1823 = vmatprep.subr.bf16.mxu0 %v1822_v6  ;;  %v1854_v6 = vpack.c.bf16 %v438_v0, %v436_v63  ;;  %v846_v0 = vld [vmem:[#allocation14] sm:$0xff] }
  0xe7   :  { %1825 = vmatpush1.bf16.msra.mxu0 %v1824_v11  ;;  %v442_v11 = vld [vmem:[#allocation8 + $0x258] sm:$0xff] }
  0xe8   :  { %1827 = vmatprep.subr.bf16.mxu0 %v1826_v12  ;;  %v1856_v12 = vpack.c.bf16 %v437_v8, %v435_v7  ;;  %v1858_v13 = vpack.c.bf16 %v442_v11, %v440_v10  ;;  %v849_v7 = vld [vmem:[#allocation14 + $0x18] sm:$0xff]  ;;  %v850_v8 = vld [vmem:[#allocation14 + $0x20] sm:$0xff]  ;;  %v623_v10 = vld [vmem:[#allocation9 + $0x10] sm:$0xff] }
  0xeb   :  { %1829 = vmatpush1.bf16.msra.mxu0 %v1828_v17  ;;  %v446_v17 = vld [vmem:[#allocation8 + $0x278] sm:$0xff] }
  0xec   :  { %1831 = vmatprep.subr.bf16.mxu0 %v1830_v18  ;;  %v1860_v18 = vpack.c.bf16 %v441_v15, %v439_v14  ;;  %v1862_v19 = vpack.c.bf16 %v446_v17, %v444_v16  ;;  %v624_v14 = vld [vmem:[#allocation9 + $0x18] sm:$0xff]  ;;  %v854_v16 = vld [vmem:[#allocation14 + $0x40] sm:$0xff]  ;;  %v855_v17 = vld [vmem:[#allocation14 + $0x48] sm:$0xff] }
  0xef   :  { %1833 = vmatpush1.bf16.msra.mxu0 %v1832_v24  ;;  %v450_v24 = vld [vmem:[#allocation8 + $0x298] sm:$0xff] }
  0xf0   :  { %1835 = vmatprep.subr.bf16.mxu0 %v1834_v25  ;;  %v1864_v25 = vpack.c.bf16 %v445_v21, %v443_v20  ;;  %v1866_v26 = vpack.c.bf16 %v450_v24, %v448_v23  ;;  %v856_v20 = vld [vmem:[#allocation14 + $0x50] sm:$0xff]  ;;  %v857_v21 = vld [vmem:[#allocation14 + $0x58] sm:$0xff]  ;;  %v626_v23 = vld [vmem:[#allocation9 + $0x28] sm:$0xff] }
  0xf1   :  { %v1898_v24 = vpack.c.bf16 %v857_v21, %v856_v20  ;;  %v822_v21 = vld [vmem:[#allocation12 + $0x80] sm:$0xff] }
  0xf3   :  { %1837 = vmatpush1.bf16.msra.mxu0 %v1836_v30  ;;  %v454_v30 = vld [vmem:[#allocation8 + $0x2b8] sm:$0xff] }
  0xf4   :  { %1839 = vmatprep.subr.bf16.mxu0 %v1838_v31  ;;  %v1868_v31 = vpack.c.bf16 %v449_v28, %v447_v27  ;;  %v1870_v32 = vpack.c.bf16 %v454_v30, %v452_v29  ;;  %v627_v27 = vld [vmem:[#allocation9 + $0x30] sm:$0xff]  ;;  %v861_v30 = vld [vmem:[#allocation14 + $0x78] sm:$0xff] }
  0xf5   :  { %v860_v29 = vld [vmem:[#allocation14 + $0x70] sm:$0xff] }
  0xf7   :  { %1841 = vmatpush1.bf16.msra.mxu0 %v1840_v36  ;;  %v458_v36 = vld [vmem:[#allocation8 + $0x2d8] sm:$0xff] }
  0xf8   :  { %1843 = vmatprep.subr.bf16.mxu0 %v1842_v37  ;;  %v214_v37 = vsub.s32 2, %v2562_v51  ;;  %v1874_v39 = vpack.c.bf16 %v458_v36, %v456_v35  ;;  %v622_v51 = vld [vmem:[#allocation9 + $0x8] sm:$0xff]  ;;  %v831_v35 = vld [vmem:[#allocation3 + $0x8] sm:$0xff]  ;;  %v1907_v36 = vpack.c.bf16 %v863_v34, %v862_v33 }
  0xf9   :  { %v829_v33 = vld [vmem:[#allocation12 + $0xb8] sm:$0xff] }
  0xfa   :  { %v215_v44 = vrot.slane %v2568_v53, %v214_v37  ;;  %v864_v37 = vld [vmem:[#allocation14 + $0x90] sm:$0xff] }
  0xfb   :  { %1845 = vmatpush1.bf16.msra.mxu0 %v1844_v40  ;;  %v455_v40 = vld [vmem:[#allocation8 + $0x2c0] sm:$0xff] }
  0xfc   :  { %1847 = vmatprep.subr.bf16.mxu0 %v1846_v43  ;;  %v462_v43 = vld [vmem:[#allocation8 + $0x2f8] sm:$0xff]  ;;  %v1876_v45 = vpack.c.bf16 %v457_v41, %v455_v40  ;;  %v866_v40 = vld [vmem:[#allocation14 + $0xa0] sm:$0xff]  ;;  %v867_v41 = vld [vmem:[#allocation14 + $0xa8] sm:$0xff] }
  0xff   :  { %1849 = vmatpush1.bf16.msra.mxu0 %v1848_v46  ;;  %v1878_v46 = vpack.c.bf16 %v462_v43, %v460_v42  ;;  %v1913_v42 = vpack.c.bf16 %v867_v41, %v866_v40  ;;  %v868_v43 = vld [vmem:[#allocation14 + $0xb0] sm:$0xff]  ;;  %v775_v41 = vld [vmem:[#allocation11 + $0x8] sm:$0xff] }
 0x100   :  { %1851 = vmatprep.subr.bf16.mxu0 %v1850_v49 }
 0x196   :  { %v289_v57 = vpop.f32.mrb[0].mxu1 }
 0x197   :  { %v290_v58 = vadd.f32 %v289_v57, %v207_v55  ;;  %v291_v59 = vpop.f32.mrb[1].mxu1 }
 0x198   :  { %v292_v62 = vadd.f32 %v291_v59, %v211_v56  ;;  %v463_v56 = vld [vmem:[%s2700_s5] sm:$0x3] }
 0x199   :  { %v364_v5 = vmax.f32 %v290_v58, 0.0  ;;  %v468_v53 = vrot.slane %v463_v56, %v206_v52  ;;  %v472_v57 = vrot.slane %v463_v56, %v210_v54  ;;  %v848_v52 = vld [vmem:[#allocation14 + $0x10] sm:$0xff]  ;;  %v833_v56 = vld [vmem:[#allocation3 + $0x18] sm:$0xff] }
 0x19a   :  { %v365_v2 = vmax.f32 %v292_v62, 0.0  ;;  %v360_v4 = vpop.f32.mrb[2].mxu1  ;;  %v1886_v54 = vpack.c.bf16 %v849_v7, %v848_v52  ;;  %v839_v52 = vld [vmem:[#allocation3 + $0x48] sm:$0xff] }
 0x19b   :  { %v1703_v9 = vpop.f32.mrb[3].mxu1  ;;  %v361_v49 = vadd.f32 %v360_v4, %v215_v44  ;;  %v869_v44 = vld [vmem:[#allocation14 + $0xb8] sm:$0x3] }
 0x19c   :  { %539 = vmatprep.mubr.f32.mxu0 %v365_v2  ;;  %v847_v2 = vld [vmem:[#allocation14 + $0x8] sm:$0xff] }
 0x19d   :  { %540 = vmatmul.mubr.f32.vlgmr.msra.gmra.mrb[0].mxu0 %v364_v5  ;;  %v366_v55 = vmax.f32 %v361_v49, 0.0  ;;  %v621_v5 = vld [vmem:[#allocation9] sm:$0xff]  ;;  %v851_v9 = vld [vmem:[#allocation14 + $0x28] sm:$0xff] }
 0x19e   :  { %1853 = vmatpush1.bf16.msra.mxu0 %v1852_v3  ;;  %610 = vmatprep.mubr.f32.mxu0 %v2299_v1  ;;  %v1889_v11 = vpack.c.bf16 %v851_v9, %v850_v8  ;;  %v817_v8 = vld [vmem:[#allocation12 + $0x58] sm:$0xff]  ;;  %v841_v9 = vld [vmem:[#allocation3 + $0x58] sm:$0xff] }
 0x19f   :  { %1855 = vmatprep.subr.bf16.mxu0 %v1854_v6  ;;  %v1883_v6 = vpack.c.bf16 %v847_v2, %v846_v0  ;;  %v813_v0 = vld [vmem:[#allocation12 + $0x38] sm:$0xff]  ;;  %v837_v2 = vld [vmem:[#allocation3 + $0x38] sm:$0xff] }
 0x1a2   :  { %1857 = vmatpush1.bf16.msra.mxu0 %v1856_v12  ;;  %v852_v12 = vld [vmem:[#allocation14 + $0x30] sm:$0xff] }
 0x1a3   :  { %1859 = vmatprep.subr.bf16.mxu0 %v1858_v13  ;;  %v853_v13 = vld [vmem:[#allocation14 + $0x38] sm:$0xff] }
 0x1a4   :  { %v1892_v15 = vpack.c.bf16 %v853_v13, %v852_v12  ;;  %v818_v12 = vld [vmem:[#allocation12 + $0x60] sm:$0xff]  ;;  %v819_v13 = vld [vmem:[#allocation12 + $0x68] sm:$0xff] }
 0x1a6   :  { %1861 = vmatpush1.bf16.msra.mxu0 %v1860_v18  ;;  %v625_v18 = vld [vmem:[#allocation9 + $0x20] sm:$0xff] }
 0x1a7   :  { %1863 = vmatprep.subr.bf16.mxu0 %v1862_v19  ;;  %v1895_v19 = vpack.c.bf16 %v855_v17, %v854_v16  ;;  %v842_v16 = vld [vmem:[#allocation3 + $0x60] sm:$0xff] }
 0x1a8   :  { %v820_v17 = vld [vmem:[#allocation12 + $0x70] sm:$0xff] }
 0x1aa   :  { %1865 = vmatpush1.bf16.msra.mxu0 %v1864_v25  ;;  %v858_v25 = vld [vmem:[#allocation14 + $0x60] sm:$0xff] }
 0x1ab   :  { %1867 = vmatprep.subr.bf16.mxu0 %v1866_v26  ;;  %v859_v26 = vld [vmem:[#allocation14 + $0x68] sm:$0xff] }
 0x1ac   :  { %v1901_v28 = vpack.c.bf16 %v859_v26, %v858_v25  ;;  %v824_v25 = vld [vmem:[#allocation12 + $0x90] sm:$0xff]  ;;  %v825_v26 = vld [vmem:[#allocation12 + $0x98] sm:$0xff] }
 0x1ae   :  { %1869 = vmatpush1.bf16.msra.mxu0 %v1868_v31  ;;  %v628_v31 = vld [vmem:[#allocation9 + $0x38] sm:$0xff] }
 0x1af   :  { %1871 = vmatprep.subr.bf16.mxu0 %v1870_v32  ;;  %v1904_v32 = vpack.c.bf16 %v861_v30, %v860_v29  ;;  %v827_v29 = vld [vmem:[#allocation12 + $0xa8] sm:$0xff]  ;;  %v844_v30 = vld [vmem:[#allocation3 + $0x70] sm:$0xff] }
 0x1b2   :  { %1873 = vmatpush1.bf16.msra.mxu0 %v1872_v38  ;;  %v865_v38 = vld [vmem:[#allocation14 + $0x98] sm:$0xff] }
 0x1b3   :  { %1875 = vmatprep.subr.bf16.mxu0 %v1874_v39  ;;  %v1910_v39 = vpack.c.bf16 %v865_v38, %v864_v37  ;;  %v1158_v38 = vld [vmem:[#allocation15 + $0x10] sm:$0xff] }
 0x1b6   :  { %1877 = vmatpush1.bf16.msra.mxu0 %v1876_v45  ;;  %v1916_v45 = vpack.c.bf16 %v869_v44, %v868_v43  ;;  %v774_v43 = vld [vmem:[#allocation11] sm:$0xff] }
 0x1b7   :  { %1879 = vmatprep.subr.bf16.mxu0 %v1878_v46  ;;  %v806_v46 = vld [vmem:[#allocation12] sm:$0xff] }
 0x1b8   :  { %v1920_v49 = vpack.c.bf16 %v807_v47, %v806_v46  ;;  %v777_v47 = vld [vmem:[#allocation11 + $0x18] sm:$0xff] }
 0x1ba   :  { %1881 = vmatpush1.bf16.msra.mxu0 %v1880_v50  ;;  %v808_v50 = vld [vmem:[#allocation12 + $0x10] sm:$0xff] }
 0x1bd   :  { %611 = vmatmul.mubr.f32.vlgmr.msra.gmra.mrb[0].mxu0 %v366_v55  ;;  %v809_v55 = vld [vmem:[#allocation12 + $0x18] sm:$0xff] }
 0x290   :  { %v612_v58 = vpop.f32.mrb[0].mxu0 }
 0x291   :  { %v1999_v59 = vadd.f32 %v612_v58, %v468_v53  ;;  %v614_v60 = vpop.f32.mrb[1].mxu0  ;;  %v1923_v53 = vpack.c.bf16 %v809_v55, %v808_v50  ;;  %v810_v58 = vld [vmem:[#allocation12 + $0x20] sm:$0xff] }
 0x292   :  { %v2000_v61 = vadd.f32 %v614_v60, %v472_v57  ;;  %v832_v57 = vld [vmem:[#allocation3 + $0x10] sm:$0xff]  ;;  %v835_v60 = vld [vmem:[#allocation3 + $0x28] sm:$0xff] }
 0x293   :  { %v617_v62 = vmax.f32 %v1999_v59, 0.0  ;;  %v811_v59 = vld [vmem:[#allocation12 + $0x28] sm:$0xff] }
 0x294   :  { %v618_v63 = vmax.f32 %v2000_v61, 0.0  ;;  %v1926_v61 = vpack.c.bf16 %v811_v59, %v810_v58  ;;  %v778_v58 = vld [vmem:[#allocation11 + $0x20] sm:$0xff] }
 0x295   :  { %v619_v4 = vmax.f32 %v617_v62, 0.0  ;;  %v834_v62 = vld [vmem:[#allocation3 + $0x20] sm:$0xff] }
 0x296   :  { %v620_v3 = vmax.f32 %v618_v63, 0.0  ;;  %v812_v63 = vld [vmem:[#allocation12 + $0x30] sm:$0xff] }
 0x298   :  { %1606 = vmatprep.subr.msk.mxu1 %vm654_vm2, %v620_v3  ;;  %v1929_v3 = vpack.c.bf16 %v813_v0, %v812_v63  ;;  %v780_v0 = vld [vmem:[#allocation11 + $0x30] sm:$0xff] }
 0x299   :  { %1607 = vmatpush1.msk.msra.mxu1 %vm654_vm2, %v619_v4  ;;  %v836_v4 = vld [vmem:[#allocation3 + $0x30] sm:$0xff] }
 0x29a   :  { %1608 = vmatmul.mubr.msk.f32.vlgmr.msra.gmra.mrb[4].mxu1 %vm629_vm3, %v621_v5  ;;  %1882 = vmatprep.subr.bf16.mxu1 %v2300_v22  ;;  %v814_v5 = vld [vmem:[#allocation12 + $0x40] sm:$0xff] }
 0x29b   :  { %731 = vmatprep.mubr.f32.mxu1 %v2299_v1  ;;  %1884 = vmatpush1.bf16.msra.mxu1 %v1883_v6  ;;  %v815_v6 = vld [vmem:[#allocation12 + $0x48] sm:$0xff] }
 0x29c   :  { %1885 = vmatprep.subr.bf16.mxu1 %v2300_v22  ;;  %v1932_v7 = vpack.c.bf16 %v815_v6, %v814_v5  ;;  %v783_v5 = vld [vmem:[#allocation11 + $0x48] sm:$0xff] }
 0x29e   :  { %1609 = vmatmul.mubr.msk.f32.gmra.mrb[6].mxu1 %vm629_vm3, %v622_v51  ;;  %v838_v51 = vld [vmem:[#allocation3 + $0x40] sm:$0xff] }
 0x29f   :  { %737 = vmatprep.mubr.f32.mxu1 %v2299_v1  ;;  %1887 = vmatpush1.bf16.msra.mxu1 %v1886_v54  ;;  %v816_v54 = vld [vmem:[#allocation12 + $0x50] sm:$0xff] }
 0x2a0   :  { %1888 = vmatprep.subr.bf16.mxu1 %v2300_v22 }
 0x2a2   :  { %1610 = vmatmul.mubr.msk.f32.gmra.mrb[8].mxu1 %vm629_vm3, %v623_v10  ;;  %v1935_v10 = vpack.c.bf16 %v817_v8, %v816_v54  ;;  %v785_v8 = vld [vmem:[#allocation11 + $0x58] sm:$0xff] }
 0x2a3   :  { %743 = vmatprep.mubr.f32.mxu1 %v2299_v1  ;;  %1890 = vmatpush1.bf16.msra.mxu1 %v1889_v11  ;;  %v840_v11 = vld [vmem:[#allocation3 + $0x50] sm:$0xff] }
 0x2a4   :  { %1891 = vmatprep.subr.bf16.mxu1 %v2300_v22 }
 0x2a6   :  { %1611 = vmatmul.mubr.msk.f32.gmra.mrb[10].mxu1 %vm629_vm3, %v624_v14  ;;  %v843_v14 = vld [vmem:[#allocation3 + $0x68] sm:$0xff] }
 0x2a7   :  { %749 = vmatprep.mubr.f32.mxu1 %v2299_v1  ;;  %1893 = vmatpush1.bf16.msra.mxu1 %v1892_v15  ;;  %v1938_v15 = vpack.c.bf16 %v819_v13, %v818_v12 }
 0x2a8   :  { %1894 = vmatprep.subr.bf16.mxu1 %v2300_v22 }
 0x2aa   :  { %1612 = vmatmul.mubr.msk.f32.gmra.mrb[12].mxu1 %vm629_vm3, %v625_v18  ;;  %v821_v18 = vld [vmem:[#allocation12 + $0x78] sm:$0xff] }
 0x2ab   :  { %755 = vmatprep.mubr.f32.mxu1 %v2299_v1  ;;  %1896 = vmatpush1.bf16.msra.mxu1 %v1895_v19  ;;  %v845_v19 = vld [vmem:[#allocation3 + $0x78] sm:$0xff]  ;;  %v1941_v20 = vpack.c.bf16 %v821_v18, %v820_v17 }
 0x2ac   :  { %1897 = vmatprep.subr.bf16.mxu1 %v2300_v22 }
 0x2ae   :  { %1613 = vmatmul.mubr.msk.f32.gmra.mrb[14].mxu1 %vm629_vm3, %v626_v23  ;;  %v823_v23 = vld [vmem:[#allocation12 + $0x88] sm:$0xff] }
 0x2af   :  { %761 = vmatprep.mubr.f32.mxu1 %v2299_v1  ;;  %1899 = vmatpush1.bf16.msra.mxu1 %v1898_v24  ;;  %v1944_v24 = vpack.c.bf16 %v823_v23, %v822_v21  ;;  %v788_v23 = vld [vmem:[#allocation11 + $0x70] sm:$0xff] }
 0x2b0   :  { %1900 = vmatprep.subr.bf16.mxu1 %v2300_v22 }
 0x2b2   :  { %1614 = vmatmul.mubr.msk.f32.gmra.mrb[16].mxu1 %vm629_vm3, %v627_v27  ;;  %v1947_v27 = vpack.c.bf16 %v825_v26, %v824_v25 }
 0x2b3   :  { %767 = vmatprep.mubr.f32.mxu1 %v2299_v1  ;;  %1902 = vmatpush1.bf16.msra.mxu1 %v1901_v28  ;;  %v826_v28 = vld [vmem:[#allocation12 + $0xa0] sm:$0xff] }
 0x2b4   :  { %1903 = vmatprep.subr.bf16.mxu1 %v2300_v22 }
 0x2b6   :  { %1615 = vmatmul.mubr.msk.f32.gmra.mrb[18].mxu1 %vm629_vm3, %v628_v31  ;;  %v1950_v31 = vpack.c.bf16 %v827_v29, %v826_v28 }
 0x2b7   :  { %1905 = vmatpush1.bf16.msra.mxu1 %v1904_v32  ;;  %1617 = vmatprep.mubr.msk.f32.mxu1 %vm870_vm4, %v831_v35  ;;  %v828_v32 = vld [vmem:[#allocation12 + $0xb0] sm:$0xff]  ;;  %v1156_v35 = vld [vmem:[#allocation15] sm:$0xff] }
 0x2b8   :  { %1906 = vmatprep.subr.bf16.mxu1 %v2300_v22  ;;  %v1953_v34 = vpack.c.bf16 %v829_v33, %v828_v32 }
 0x2bb   :  { %1908 = vmatpush1.bf16.msra.mxu1 %v1907_v36  ;;  %v1157_v36 = vld [vmem:[#allocation15 + $0x8] sm:$0xff] }
 0x2bc   :  { %1909 = vmatprep.subr.bf16.mxu1 %v2300_v22  ;;  %v1955_v37 = vpack.c.bf16 %v1157_v36, %v1156_v35 }
 0x2be   :  { %1956 = vmatprep.subr.bf16.mxu0 %v1955_v37 }
 0x2bf   :  { %1911 = vmatpush1.bf16.msra.mxu1 %v1910_v39  ;;  %v1159_v39 = vld [vmem:[#allocation15 + $0x18] sm:$0xff]  ;;  %1958 = vmatpush3.bf16.msra.mxu0 %v1955_v37 }
 0x2c0   :  { %1912 = vmatprep.subr.bf16.mxu1 %v2300_v22  ;;  %v1959_v40 = vpack.c.bf16 %v1159_v39, %v1158_v38 }
 0x2c2   :  { %1960 = vmatprep.subr.bf16.mxu0 %v1959_v40 }
 0x2c3   :  { %1914 = vmatpush1.bf16.msra.mxu1 %v1913_v42  ;;  %1962 = vmatpush3.bf16.msra.mxu0 %v1959_v40 }
 0x2c4   :  { %1915 = vmatprep.subr.bf16.mxu1 %v2300_v22 }
 0x2c7   :  { %1918 = vmatpush1.bf16.msk.msra.mxu1 %vm1917_vm6, %v1916_v45 }
 0x2c8   :  { %1919 = vmatprep.subr.bf16.mxu1 %v2300_v22 }
 0x2ca   :  { %963 = vmatmul.mubr.f32.vlgmr.msra.gmra.mrb[20].mxu1 %v830_v48 }
 0x2cb   :  { %1921 = vmatpush1.bf16.msra.mxu1 %v1920_v49  ;;  %1618 = vmatprep.mubr.msk.f32.mxu1 %vm870_vm4, %v833_v56  ;;  %v776_v49 = vld [vmem:[#allocation11 + $0x10] sm:$0xff] }
 0x2cc   :  { %1922 = vmatprep.subr.bf16.mxu1 %v2300_v22 }
 0x2ce   :  { %968 = vmatmul.mubr.f32.gmra.mrb[22].mxu1 %v832_v57 }
 0x2cf   :  { %1924 = vmatpush1.bf16.msra.mxu1 %v1923_v53  ;;  %1619 = vmatprep.mubr.msk.f32.mxu1 %vm870_vm4, %v835_v60  ;;  %v779_v53 = vld [vmem:[#allocation11 + $0x28] sm:$0xff] }
 0x2d0   :  { %1925 = vmatprep.subr.bf16.mxu1 %v2300_v22 }
 0x2d2   :  { %973 = vmatmul.mubr.f32.gmra.mrb[24].mxu1 %v834_v62  ;;  %v781_v62 = vld [vmem:[#allocation11 + $0x38] sm:$0xff] }
 0x2d3   :  { %1927 = vmatpush1.bf16.msra.mxu1 %v1926_v61  ;;  %1620 = vmatprep.mubr.msk.f32.mxu1 %vm870_vm4, %v837_v2 }
 0x2d4   :  { %1928 = vmatprep.subr.bf16.mxu1 %v2300_v22 }
 0x2d6   :  { %978 = vmatmul.mubr.f32.gmra.mrb[26].mxu1 %v836_v4 }
 0x2d7   :  { %1930 = vmatpush1.bf16.msra.mxu1 %v1929_v3  ;;  %1621 = vmatprep.mubr.msk.f32.mxu1 %vm870_vm4, %v839_v52  ;;  %v782_v52 = vld [vmem:[#allocation11 + $0x40] sm:$0xff] }
 0x2d8   :  { %1931 = vmatprep.subr.bf16.mxu1 %v2300_v22 }
 0x2da   :  { %983 = vmatmul.mubr.f32.gmra.mrb[28].mxu1 %v838_v51 }
 0x2db   :  { %1933 = vmatpush1.bf16.msra.mxu1 %v1932_v7  ;;  %1622 = vmatprep.mubr.msk.f32.mxu1 %vm870_vm4, %v841_v9 }
 0x2dc   :  { %1934 = vmatprep.subr.bf16.mxu1 %v2300_v22 }
 0x2de   :  { %988 = vmatmul.mubr.f32.gmra.mrb[30].mxu1 %v840_v11 }
 0x2df   :  { %1936 = vmatpush1.bf16.msra.mxu1 %v1935_v10  ;;  %1623 = vmatprep.mubr.msk.f32.mxu1 %vm870_vm4, %v843_v14  ;;  %v784_v10 = vld [vmem:[#allocation11 + $0x50] sm:$0xff]  ;;  %v787_v14 = vld [vmem:[#allocation11 + $0x68] sm:$0xff] }
 0x2e0   :  { %1937 = vmatprep.subr.bf16.mxu1 %v2300_v22 }
 0x2e2   :  { %993 = vmatmul.mubr.f32.gmra.mrb[32].mxu1 %v842_v16  ;;  %v786_v16 = vld [vmem:[#allocation11 + $0x60] sm:$0xff] }
 0x2e3   :  { %1939 = vmatpush1.bf16.msra.mxu1 %v1938_v15  ;;  %1624 = vmatprep.mubr.msk.f32.mxu1 %vm870_vm4, %v845_v19 }
 0x2e4   :  { %1940 = vmatprep.subr.bf16.mxu1 %v2300_v22 }
 0x2e6   :  { %998 = vmatmul.mubr.f32.gmra.mrb[34].mxu1 %v844_v30 }
 0x2e7   :  { %1942 = vmatpush1.bf16.msra.mxu1 %v1941_v20  ;;  %v789_v20 = vld [vmem:[#allocation11 + $0x78] sm:$0xff] }
 0x2e8   :  { %1943 = vmatprep.subr.bf16.mxu1 %v2300_v22 }
 0x2eb   :  { %1945 = vmatpush1.bf16.msra.mxu1 %v1944_v24 }
 0x2ec   :  { %1946 = vmatprep.subr.bf16.mxu1 %v2300_v22 }
 0x2ef   :  { %1948 = vmatpush1.bf16.msra.mxu1 %v1947_v27 }
 0x2f0   :  { %1949 = vmatprep.subr.bf16.mxu1 %v2300_v22 }
 0x2f3   :  { %1951 = vmatpush1.bf16.msra.mxu1 %v1950_v31 }
 0x2f4   :  { %1952 = vmatprep.subr.bf16.mxu1 %v2300_v22 }
 0x2f7   :  { %1954 = vmatpush1.bf16.msra.mxu1 %v1953_v34 }
 0x2f8   :  { %1987 = vmatprep.subr.bf16.mxu1 %v2300_v22 }
 0x36d   :  { %v727_v42 = vpop.f32.mrb[4].mxu1 }
 0x36e   :  { %v729_v44 = vpop.f32.mrb[5].mxu1  ;;  %v790_v46 = vmul.f32 %v774_v43, %v727_v42  ;;  %v1160_v43 = vld [vmem:[#allocation15 + $0x20] sm:$0xff] }
 0x36f   :  { %v791_v45 = vmul.f32 %v775_v41, %v729_v44 }
 0x371   :  { %v733_v48 = vpop.f32.mrb[6].mxu1  ;;  %1625 = vmatprep.mubr.msk.f32.mxu1 %vm1003_vm7, %v791_v45  ;;  %v1162_v45 = vld [vmem:[#allocation15 + $0x30] sm:$0xff] }
 0x372   :  { %v735_v50 = vpop.f32.mrb[7].mxu1  ;;  %1093 = vmatmul.mubr.f32.vlgmr.msra.gmra.mrb[36].mxu1 %v790_v46  ;;  %v792_v56 = vmul.f32 %v776_v49, %v733_v48  ;;  %v1163_v46 = vld [vmem:[#allocation15 + $0x38] sm:$0xff]  ;;  %v1308_v48 = vld [vmem:[#allocation17] sm:$0xff]  ;;  %v1309_v49 = vld [vmem:[#allocation17 + $0x8] sm:$0xff] }
 0x373   :  { %v793_v55 = vmul.f32 %v777_v47, %v735_v50  ;;  %v1967_v47 = vpack.c.bf16 %v1163_v46, %v1162_v45  ;;  %v1971_v50 = vpack.c.bf16 %v1309_v49, %v1308_v48 }
 0x375   :  { %v739_v57 = vpop.f32.mrb[8].mxu1  ;;  %1626 = vmatprep.mubr.msk.f32.mxu1 %vm1003_vm7, %v793_v55 }
 0x376   :  { %v741_v59 = vpop.f32.mrb[9].mxu1  ;;  %1098 = vmatmul.mubr.f32.gmra.mrb[38].mxu1 %v792_v56  ;;  %v794_v61 = vmul.f32 %v778_v58, %v739_v57  ;;  %v1633_v56 = vld [vmem:[%s2705_s10] ss:$0 sm:$0xff] }
 0x377   :  { %v795_v60 = vmul.f32 %v779_v53, %v741_v59 }
 0x379   :  { %v745_v63 = vpop.f32.mrb[10].mxu1  ;;  %1627 = vmatprep.mubr.msk.f32.mxu1 %vm1003_vm7, %v795_v60 }
 0x37a   :  { %v747_v2 = vpop.f32.mrb[11].mxu1  ;;  %1103 = vmatmul.mubr.f32.gmra.mrb[40].mxu1 %v794_v61  ;;  %v796_v4 = vmul.f32 %v780_v0, %v745_v63  ;;  %v1310_v63 = vld [vmem:[#allocation17 + $0x10] sm:$0xff]  ;;  %v1311_v0 = vld [vmem:[#allocation17 + $0x18] sm:$0xff] }
 0x37b   :  { %v797_v3 = vmul.f32 %v781_v62, %v747_v2 }
 0x37d   :  { %v751_v6 = vpop.f32.mrb[12].mxu1  ;;  %1628 = vmatprep.mubr.msk.f32.mxu1 %vm1003_vm7, %v797_v3 }
 0x37e   :  { %v753_v7 = vpop.f32.mrb[13].mxu1  ;;  %1108 = vmatmul.mubr.f32.gmra.mrb[42].mxu1 %v796_v4  ;;  %v798_v54 = vmul.f32 %v782_v52, %v751_v6  ;;  %v1975_v52 = vpack.c.bf16 %v1311_v0, %v1310_v63 }
 0x37f   :  { %v799_v51 = vmul.f32 %v783_v5, %v753_v7  ;;  %v1312_v7 = vld [vmem:[#allocation17 + $0x20] sm:$0xff] }
 0x381   :  { %v757_v9 = vpop.f32.mrb[14].mxu1  ;;  %1629 = vmatprep.mubr.msk.f32.mxu1 %vm1003_vm7, %v799_v51  ;;  %v1313_v51 = vld [vmem:[#allocation17 + $0x28] sm:$0xff] }
 0x382   :  { %v759_v11 = vpop.f32.mrb[15].mxu1  ;;  %1113 = vmatmul.mubr.f32.gmra.mrb[44].mxu1 %v798_v54  ;;  %v800_v13 = vmul.f32 %v784_v10, %v757_v9 }
 0x383   :  { %v801_v12 = vmul.f32 %v785_v8, %v759_v11 }
 0x385   :  { %v763_v15 = vpop.f32.mrb[16].mxu1  ;;  %1630 = vmatprep.mubr.msk.f32.mxu1 %vm1003_vm7, %v801_v12  ;;  %v1979_v12 = vpack.c.bf16 %v1313_v51, %v1312_v7 }
 0x386   :  { %v765_v17 = vpop.f32.mrb[17].mxu1  ;;  %1118 = vmatmul.mubr.f32.gmra.mrb[46].mxu1 %v800_v13  ;;  %v802_v19 = vmul.f32 %v786_v16, %v763_v15 }
 0x387   :  { %v803_v18 = vmul.f32 %v787_v14, %v765_v17 }
 0x389   :  { %v769_v21 = vpop.f32.mrb[18].mxu1  ;;  %1631 = vmatprep.mubr.msk.f32.mxu1 %vm1003_vm7, %v803_v18 }
 0x38a   :  { %v771_v24 = vpop.f32.mrb[19].mxu1  ;;  %1123 = vmatmul.mubr.f32.gmra.mrb[48].mxu1 %v802_v19  ;;  %v804_v26 = vmul.f32 %v788_v23, %v769_v21 }
 0x38b   :  { %v805_v25 = vmul.f32 %v789_v20, %v771_v24 }
 0x38d   :  { %1632 = vmatprep.mubr.msk.f32.mxu1 %vm1003_vm7, %v805_v25 }
 0x38e   :  { %1128 = vmatmul.mubr.f32.gmra.mrb[50].mxu1 %v804_v26 }
 0x38f   :  { %1776 = vmatprep.mubr.msk.f32.mxu1 %vm2301_vm1, %v2299_v1  ;;  %v1161_v1 = vld [vmem:[#allocation15 + $0x28] sm:$0xff] }
 0x390   :  { %v1963_v44 = vpack.c.bf16 %v1161_v1, %v1160_v43 }
 0x392   :  { %1964 = vmatprep.subr.bf16.mxu0 %v1963_v44 }
 0x393   :  { %1966 = vmatpush3.bf16.msra.mxu0 %v1963_v44 }
 0x394   :  { %1968 = vmatprep.subr.bf16.mxu0 %v1967_v47 }
 0x397   :  { %1970 = vmatpush3.bf16.msra.mxu0 %v1967_v47 }
 0x398   :  { %1972 = vmatprep.subr.bf16.mxu0 %v1971_v50 }
 0x39d   :  { %v964_v27 = vpop.f32.mrb[20].mxu1 }
 0x39e   :  { %v966_v28 = vpop.f32.mrb[21].mxu1 }
 0x3a1   :  { %v969_v29 = vpop.f32.mrb[22].mxu1 }
 0x3a2   :  { %v971_v30 = vpop.f32.mrb[23].mxu1 }
 0x3a5   :  { %v974_v31 = vpop.f32.mrb[24].mxu1 }
 0x3a6   :  { %v976_v32 = vpop.f32.mrb[25].mxu1 }
 0x3a9   :  { %v979_v33 = vpop.f32.mrb[26].mxu1 }
 0x3aa   :  { %v981_v34 = vpop.f32.mrb[27].mxu1 }
 0x3ad   :  { %v984_v35 = vpop.f32.mrb[28].mxu1 }
 0x3ae   :  { %v986_v36 = vpop.f32.mrb[29].mxu1 }
 0x3af   :  { %v1314_v36 = vld [vmem:[#allocation17 + $0x30] sm:$0xff] }
 0x3b1   :  { %v989_v37 = vpop.f32.mrb[30].mxu1 }
 0x3b2   :  { %v991_v38 = vpop.f32.mrb[31].mxu1 }
 0x3b5   :  { %v2648_v39 = vpop.f32.mrb[32].mxu1 }
 0x3b6   :  { %v996_v40 = vpop.f32.mrb[33].mxu1 }
 0x3b9   :  { %v2650_v41 = vpop.f32.mrb[34].mxu1 }
 0x3ba   :  { %v1001_v42 = vpop.f32.mrb[35].mxu1 }
 0x445   :  { %v1094_v55 = vpop.f32.mrb[36].mxu1 }
 0x446   :  { %v1095_v53 = vadd.f32 %v1094_v55, %v964_v27  ;;  %v1096_v57 = vpop.f32.mrb[37].mxu1 }
 0x448   :  { %v1140_v58 = vadd.f32 %v1633_v56, %v1095_v53 }
 0x449   :  { %v1099_v59 = vpop.f32.mrb[38].mxu1 }
 0x44a   :  { %v1148_v60 = vmax.f32 %v1140_v58, 0.0  ;;  %v1100_v61 = vadd.f32 %v1099_v59, %v969_v29  ;;  %v1101_v62 = vpop.f32.mrb[39].mxu1 }
 0x44c   :  { %v1141_v2 = vadd.f32 %v1633_v56, %v1100_v61  ;;  %1720 = vmatprep.mubr.msk.f32.mxu0 %vm1003_vm7, %v1148_v60 }
 0x44d   :  { %v1104_v3 = vpop.f32.mrb[40].mxu1 }
 0x44e   :  { %v1149_v4 = vmax.f32 %v1141_v2, 0.0  ;;  %v1105_v5 = vadd.f32 %v1104_v3, %v974_v31  ;;  %v1106_v6 = vpop.f32.mrb[41].mxu1  ;;  %v2303_v3 = vmov 0  }
 0x44f   :  { %2025 = vset.pattern.permute.xlu0 %v2303_v3  ;;  %2026 = vset.pattern.permute.xlu1 %v2303_v3 }
 0x450   :  { %v1142_v54 = vadd.f32 %v1633_v56, %v1105_v5  ;;  %1721 = vmatmul.mubr.msk.f32.vlgmr.msra.gmra.mrb[2].mxu0 %vm1003_vm7, %v1149_v4  ;;  %v1643_v4 = vld [vmem:[#allocation2] ss:$0 sm:$0xff] }
 0x451   :  { %v1109_v8 = vpop.f32.mrb[42].mxu1  ;;  %1974 = vmatpush3.bf16.msra.mxu0 %v1971_v50 }
 0x452   :  { %v1150_v9 = vmax.f32 %v1142_v54, 0.0  ;;  %v1110_v10 = vadd.f32 %v1109_v8, %v979_v33  ;;  %v1111_v11 = vpop.f32.mrb[43].mxu1  ;;  %1976 = vmatprep.subr.bf16.mxu0 %v1975_v52 }
 0x454   :  { %v1143_v13 = vadd.f32 %v1633_v56, %v1110_v10  ;;  %1723 = vmatprep.mubr.msk.f32.mxu0 %vm1003_vm7, %v1150_v9 }
 0x455   :  { %v1114_v14 = vpop.f32.mrb[44].mxu1  ;;  %1978 = vmatpush3.bf16.msra.mxu0 %v1975_v52 }
 0x456   :  { %v1151_v15 = vmax.f32 %v1143_v13, 0.0  ;;  %v1115_v16 = vadd.f32 %v1114_v14, %v984_v35  ;;  %v1116_v17 = vpop.f32.mrb[45].mxu1  ;;  %1980 = vmatprep.subr.bf16.mxu0 %v1979_v12 }
 0x458   :  { %v1144_v18 = vadd.f32 %v1633_v56, %v1115_v16  ;;  %1724 = vmatmul.mubr.msk.f32.gmra.mrb[4].mxu0 %vm1003_vm7, %v1151_v15 }
 0x459   :  { %v1119_v19 = vpop.f32.mrb[46].mxu1  ;;  %1982 = vmatpush3.bf16.msra.mxu0 %v1979_v12 }
 0x45a   :  { %v1152_v20 = vmax.f32 %v1144_v18, 0.0  ;;  %v1120_v21 = vadd.f32 %v1119_v19, %v989_v37  ;;  %v1121_v23 = vpop.f32.mrb[47].mxu1  ;;  %v1315_v37 = vld [vmem:[#allocation17 + $0x38] sm:$0xff]  ;;  %v1453_v19 = vld [vmem:[#allocation18] sm:$0xff] }
 0x45b   :  { %v1983_v38 = vpack.c.bf16 %v1315_v37, %v1314_v36 }
 0x45c   :  { %v1145_v24 = vadd.f32 %v1633_v56, %v1120_v21  ;;  %1726 = vmatprep.mubr.msk.f32.mxu0 %vm1003_vm7, %v1152_v20  ;;  %v1454_v20 = vld [vmem:[#allocation18 + $0x8] sm:$0xff] }
 0x45d   :  { %v1124_v25 = vpop.f32.mrb[48].mxu1  ;;  %1984 = vmatprep.subr.bf16.mxu0 %v1983_v38 }
 0x45e   :  { %v1153_v26 = vmax.f32 %v1145_v24, 0.0  ;;  %v1125_v27 = vadd.f32 %v1124_v25, %v2648_v39  ;;  %v1126_v28 = vpop.f32.mrb[49].mxu1  ;;  %1986 = vmatpush3.bf16.msra.mxu0 %v1983_v38  ;;  %v1634_v39 = vld [vmem:[%s2707_s12] ss:$0 sm:$0xff] }
 0x45f   :  { %v1455_v28 = vld [vmem:[#allocation18 + $0x10] sm:$0xff] }
 0x460   :  { %v1146_v29 = vadd.f32 %v1633_v56, %v1125_v27  ;;  %1727 = vmatmul.mubr.msk.f32.gmra.mrb[6].mxu0 %vm1003_vm7, %v1153_v26  ;;  %v1456_v27 = vld [vmem:[#allocation18 + $0x18] sm:$0xff] }
 0x461   :  { %v1129_v30 = vpop.f32.mrb[50].mxu1 }
 0x462   :  { %v1154_v31 = vmax.f32 %v1146_v29, 0.0  ;;  %v1130_v32 = vadd.f32 %v1129_v30, %v2650_v41  ;;  %v1131_v33 = vpop.f32.mrb[51].mxu1 }
 0x464   :  { %v1147_v34 = vadd.f32 %v1633_v56, %v1130_v32  ;;  %1729 = vmatprep.mubr.msk.f32.mxu0 %vm1003_vm7, %v1154_v31  ;;  %v1458_v32 = vld [vmem:[#allocation18 + $0x28] sm:$0xff] }
 0x466   :  { %v1155_v35 = vmax.f32 %v1147_v34, 0.0  ;;  %v1457_v34 = vld [vmem:[#allocation18 + $0x20] sm:$0xff] }
 0x468   :  { %1730 = vmatmul.mubr.msk.f32.gmra.mrb[8].mxu0 %vm1003_vm7, %v1155_v35 }
 0x523   :  { %v1722_v40 = vpop.f32.mrb[2].mxu0 }
 0x524   :  { %v1267_v42 = vadd.f32 %v1722_v40, %v1634_v39  ;;  %v1261_v43 = vpop.f32.mrb[3].mxu0  ;;  %v1460_v40 = vld [vmem:[#allocation18 + $0x38] sm:$0xff] }
 0x525   :  { %v1262_v41 = vadd.f32 %v1634_v39, %v1261_v43 }
 0x526   :  { %v1301_v44 = vmax.f32 %v1267_v42, 0.0  ;;  %v1459_v42 = vld [vmem:[#allocation18 + $0x30] sm:$0xff] }
 0x527   :  { %v1300_v1 = vmax.f32 %v1262_v41, 0.0 }
 0x529   :  { %1748 = vmatprep.mubr.msk.f32.mxu0 %vm1003_vm7, %v1300_v1 }
 0x52a   :  { %1749 = vmatmul.mubr.msk.f32.vlgmr.msra.gmra.mrb[10].mxu0 %vm1003_vm7, %v1301_v44 }
 0x52b   :  { %v1725_v45 = vpop.f32.mrb[4].mxu0 }
 0x52c   :  { %v1277_v46 = vadd.f32 %v1725_v45, %v1634_v39  ;;  %v1271_v47 = vpop.f32.mrb[5].mxu0 }
 0x52d   :  { %v1272_v48 = vadd.f32 %v1634_v39, %v1271_v47 }
 0x52e   :  { %v1303_v50 = vmax.f32 %v1277_v46, 0.0  ;;  %v1452_v46 = vld [vmem:[%s2711_s16] sm:$0x3] }
 0x52f   :  { %v1302_v49 = vmax.f32 %v1272_v48, 0.0 }
 0x531   :  { %1751 = vmatprep.mubr.msk.f32.mxu0 %vm1003_vm7, %v1302_v49 }
 0x532   :  { %1752 = vmatmul.mubr.msk.f32.gmra.mrb[12].mxu0 %vm1003_vm7, %v1303_v50 }
 0x533   :  { %v1728_v55 = vpop.f32.mrb[6].mxu0 }
 0x534   :  { %v1287_v56 = vadd.f32 %v1728_v55, %v1634_v39  ;;  %v1281_v53 = vpop.f32.mrb[7].mxu0 }
 0x535   :  { %v1282_v57 = vadd.f32 %v1634_v39, %v1281_v53 }
 0x536   :  { %v1305_v59 = vmax.f32 %v1287_v56, 0.0 }
 0x537   :  { %v1304_v58 = vmax.f32 %v1282_v57, 0.0 }
 0x539   :  { %1754 = vmatprep.mubr.msk.f32.mxu0 %vm1003_vm7, %v1304_v58 }
 0x53a   :  { %1755 = vmatmul.mubr.msk.f32.gmra.mrb[14].mxu0 %vm1003_vm7, %v1305_v59 }
 0x53b   :  { %v1731_v60 = vpop.f32.mrb[8].mxu0 }
 0x53c   :  { %v1297_v61 = vadd.f32 %v1731_v60, %v1634_v39  ;;  %v1291_v62 = vpop.f32.mrb[9].mxu0 }
 0x53d   :  { %v1292_v63 = vadd.f32 %v1634_v39, %v1291_v62 }
 0x53e   :  { %v1307_v2 = vmax.f32 %v1297_v61, 0.0 }
 0x53f   :  { %v1306_v0 = vmax.f32 %v1292_v63, 0.0 }
 0x541   :  { %1757 = vmatprep.mubr.msk.f32.mxu0 %vm1003_vm7, %v1306_v0 }
 0x542   :  { %1758 = vmatmul.mubr.msk.f32.gmra.mrb[16].mxu0 %vm1003_vm7, %v1307_v2 }
 0x5fd   :  { %v1750_v5 = vpop.f32.mrb[10].mxu0 }
 0x5fe   :  { %v1413_v6 = vpop.f32.mrb[11].mxu0  ;;  %v1419_v7 = vadd.f32 %v1750_v5, %v1643_v4 }
 0x5ff   :  { %v1414_v52 = vadd.f32 %v1643_v4, %v1413_v6 }
 0x601   :  { %1463 = vperm.xlu0 %2025, %v1414_v52  }
 0x605   :  { %v1753_v51 = vpop.f32.mrb[12].mxu0  ;;  %1468 = vperm.xlu0 %2025, %v1419_v7  }
 0x606   :  { %v1429_v54 = vadd.f32 %v1753_v51, %v1643_v4  ;;  %v1423_v8 = vpop.f32.mrb[13].mxu0 }
 0x607   :  { %v1424_v9 = vadd.f32 %v1643_v4, %v1423_v8 }
 0x608   :  { %1478 = vperm.xlu1 %2026, %v1429_v54  }
 0x60c   :  { %1473 = vperm.xlu1 %2026, %v1424_v9  }
 0x60d   :  { %v1756_v10 = vpop.f32.mrb[14].mxu0 }
 0x60e   :  { %v1439_v11 = vadd.f32 %v1756_v10, %v1643_v4  ;;  %v1433_v12 = vpop.f32.mrb[15].mxu0 }
 0x60f   :  { %v1434_v13 = vadd.f32 %v1643_v4, %v1433_v12 }
 0x610   :  { %1488 = vperm.xlu1 %2026, %v1439_v11  }
 0x611   :  { %1483 = vperm.xlu0 %2025, %v1434_v13  }
 0x615   :  { %v1759_v14 = vpop.f32.mrb[16].mxu0 }
 0x616   :  { %v1449_v15 = vadd.f32 %v1759_v14, %v1643_v4  ;;  %v1443_v16 = vpop.f32.mrb[17].mxu0 }
 0x617   :  { %v1444_v17 = vadd.f32 %v1643_v4, %v1443_v16 }
 0x618   :  { %1498 = vperm.xlu1 %2026, %v1449_v15  }
 0x619   :  { %1493 = vperm.xlu0 %2025, %v1444_v17  }
 0x680   :  { %v1464_v18 = vpop.permute.xlu0 %1463 }
 0x681   :  { %v1501_v23 = vmul.f32 %v1464_v18, %v1453_v19 }
 0x684   :  { %v1469_v21 = vpop.permute.xlu0 %1468 }
 0x685   :  { %v1502_v24 = vmul.f32 %v1469_v21, %v1454_v20 }
 0x687   :  { %v1988_v25 = vpack.c.bf16 %v1502_v24, %v1501_v23  ;;  %v1479_v26 = vpop.permute.xlu1 %1478 }
 0x688   :  { %v1504_v30 = vmul.f32 %v1479_v26, %v1456_v27 }
 0x689   :  { %1989 = vmatpush3.bf16.msra.mxu1 %v1988_v25 }
 0x68a   :  { %1990 = vmatprep.subr.bf16.mxu1 %v2300_v22 }
 0x68b   :  { %v1474_v29 = vpop.permute.xlu1 %1473 }
 0x68c   :  { %v1503_v31 = vmul.f32 %v1474_v29, %v1455_v28 }
 0x68e   :  { %v1991_v33 = vpack.c.bf16 %v1504_v30, %v1503_v31 }
 0x68f   :  { %v1489_v35 = vpop.permute.xlu1 %1488 }
 0x690   :  { %v1506_v36 = vmul.f32 %v1489_v35, %v1458_v32  ;;  %1992 = vmatpush3.bf16.msra.mxu1 %v1991_v33  ;;  %v1484_v37 = vpop.permute.xlu0 %1483 }
 0x691   :  { %v1505_v38 = vmul.f32 %v1484_v37, %v1457_v34  ;;  %1993 = vmatprep.subr.bf16.mxu1 %v2300_v22 }
 0x693   :  { %v1994_v39 = vpack.c.bf16 %v1506_v36, %v1505_v38 }
 0x695   :  { %1995 = vmatpush3.bf16.msra.mxu1 %v1994_v39 }
 0x696   :  { %1996 = vmatprep.subr.bf16.mxu1 %v2300_v22 }
 0x697   :  { %v1499_v43 = vpop.permute.xlu1 %1498 }
 0x698   :  { %v1508_v41 = vmul.f32 %v1499_v43, %v1460_v40  ;;  %v1494_v1 = vpop.permute.xlu0 %1493 }
 0x699   :  { %v1507_v44 = vmul.f32 %v1494_v1, %v1459_v42 }
 0x69b   :  { %v1997_v45 = vpack.c.bf16 %v1508_v41, %v1507_v44 }
 0x69d   :  { %1998 = vmatpush3.bf16.msra.mxu1 %v1997_v45 }
 0x6a0   :  { %1777 = vmatmul.mubr.msk.f32.vlgmr.msra.gmra.mrb[52].mxu1 %vm1003_vm7, %v1452_v46 }
 0x773   :  { %v1578_v47 = vpop.f32.mrb[52].mxu1 }
 0x774   :  { %v1778_v48 = vpop.f32.mrb[53].mxu1  ;;  %1583 = vst.msk [vmem:[#allocation20] sm:$0x3] %vm1582_vm8, %v1578_v47 }
 0x775   :  { %2258 = shalt.err (!%p2255_p0)
}
 0x776   :  { %s2259_s16 = scalar_lea.hbm %s2712_s17, 32 }
 0x777   :  { %p2260_p1 = scmp.ne.s32.totalorder %s2712_s17, %s2259_s16  ;;  %p2263_p2 = scmp.lt.u32.totalorder %s2259_s16, %s2712_s17 }
 0x779   :  { %p2265_p3 = pnand %p2263_p2, %p2260_p1 }
 0x77b   :  { %2268 = shalt.err (!%p2265_p3)
}
 0x77c   :  { %1593 = dma.vmem_to_hbm [thread:$0]  %s1591_s23, 32, %s2712_s17, [#allocation5]  }
 0x77d   :  { %2281 = dma.done.wait [#allocation5], 32  }
 0x77e   :  { %2282 = vsyncadd [#allocation5], 4294967264 }
 0x77f   :  { %1597 = vsyncpa [#allocation4], 1 }
 0x780   :  { %1598 = vsyncpa [#allocation7], 1 }
 0x781   :  { %1599 = vsyncpa [#allocation10], 1 }
 0x782   :  { %1600 = vsyncpa [#allocation13], 1 }
 0x783   :  { %1601 = vsyncpa [#allocation16], 1 }
 0x784   :  { %1602 = vsyncpa [#allocation19], 1 }
 0x785   :  { %1603 = vsyncpa [#allocation5], 1 }

</bundles_post_ra>
